<compile_context>
chip_gen: v6e
topology: v6e:2x2x1
jax: 0.10.0
libtpu: 0.0.40
codegen_flags: <defaults>
</compile_context>

<pallas_src>
import math

import jax
import jax.numpy as jnp
from jax import lax
from jax.experimental import pallas as pl
from jax.experimental.pallas import tpu as pltpu

# --------------------- synthetic hetero-graph configuration ---------------------
node_dict = {"author": 0, "paper": 1}
edge_dict = {"cites": 0, "writes": 1, "written_by": 2}
canonical_etypes = [
    ("paper", "cites", "paper"),
    ("author", "writes", "paper"),
    ("paper", "written_by", "author"),
]
n_inp_dict = {"author": 12, "paper": 20}
num_nodes = {"author": 5, "paper": 7}

N_HID = 32
N_OUT = 3
N_LAYERS = 2
N_HEADS = 2
D_K = N_HID // N_HEADS
SQRT_DK = math.sqrt(D_K)
NUM_TYPES = len(node_dict)
NUM_RELS = len(edge_dict)

N_PAD = 8           # node rows padded to a sublane multiple (covers both ntypes)
OUT_PAD = 128       # lane-dense width of the final output store

ETYPE_SRC = {edge_dict[et]: node_dict[st] for (st, et, dt) in canonical_etypes}

VMEM = pltpu.MemorySpace.VMEM
SMEM = pltpu.MemorySpace.SMEM

NEG_INF = float(jnp.finfo(jnp.float32).min)   # additive mask; exp underflows to exactly 0

# ----------------------- packed-slab index bookkeeping ---------------------------
# Weight slab: (N_W, N_HID, N_HID) bf16 — adapt / folded-k / folded-v / q / a.
_NW_LAYER = 2 * NUM_RELS + 2 * NUM_TYPES
def w_adapt(t): return t
def w_k(l, e):  return 2 + l * _NW_LAYER + 2 * e
def w_v(l, e):  return 2 + l * _NW_LAYER + 2 * e + 1
def w_q(l, t):  return 2 + l * _NW_LAYER + 2 * NUM_RELS + 2 * t
def w_a(l, t):  return 2 + l * _NW_LAYER + 2 * NUM_RELS + 2 * t + 1
N_W = 2 + N_LAYERS * _NW_LAYER          # 22

# Bias slab: (N_B, N_PAD, N_HID) f32 — every row pre-broadcast to 8 sublanes on host.
_NB_LAYER = 2 * NUM_RELS + 4 * NUM_TYPES
def b_adapt(t): return t
def b_k(l, e):  return 2 + l * _NB_LAYER + 2 * e
def b_v(l, e):  return 2 + l * _NB_LAYER + 2 * e + 1
def b_q(l, t):  return 2 + l * _NB_LAYER + 2 * NUM_RELS + 4 * t
def b_a(l, t):  return b_q(l, t) + 1
def b_g(l, t):  return b_q(l, t) + 2
def b_be(l, t): return b_q(l, t) + 3
N_B = 2 + N_LAYERS * _NB_LAYER          # 30


# ------------------------------- fused Pallas kernel -----------------------------
def _make_fused_kernel(out_id):
    """Builds the whole-forward kernel; out_id selects which ntype feeds the head."""

    def kernel(x_ref, w_ref, b_ref, adjb_ref, ow_ref, ob_ref, alpha_ref, o_ref):
        f32 = jnp.float32
        bf16 = jnp.bfloat16

        # Head lane selector generated in-kernel (no extra operand / DMA).
        lane = lax.broadcasted_iota(jnp.int32, (N_PAD, N_HID), 1)
        head0 = lane < D_K                                   # (8, 32) bool

        def mm(a, widx):
            # bf16 MXU inputs, f32 accumulate (single-pass MXU on v5e/v6e/v7x).
            return jnp.dot(a.astype(bf16), w_ref[widx], preferred_element_type=f32)

        # ---- input adaptation: h = gelu(x @ W_adapt + b); dropout(0.4) = identity ----
        # TODO(synk): PyTorch F.gelu defaults to the exact erf form; tanh approximation
        # used here (erf lowering in Mosaic is not guaranteed).
        h = [jax.nn.gelu(mm(x_ref[t], w_adapt(t)) + b_ref[b_adapt(t)], approximate=True)
             for t in range(NUM_TYPES)]

        for l in range(N_LAYERS):
            # q projection once per dst ntype; heads stacked along sublanes:
            # rows [0:8] = q masked to head-0 lanes, rows [8:16] = head-1 lanes.
            q_stack = []
            for t in range(NUM_TYPES):
                q = mm(h[t], w_q(l, t)) + b_ref[b_q(l, t)]
                q_stack.append(jnp.concatenate(
                    [jnp.where(head0, q, 0.0), jnp.where(head0, 0.0, q)], axis=0))

            agg = [[] for _ in range(NUM_TYPES)]
            for (srctype, etype, dsttype) in canonical_etypes:
                e = edge_dict[etype]
                s = node_dict[srctype]
                d = node_dict[dsttype]
                # relation_att (pre-scaled by pri/sqrt(dk)) and relation_msg are folded
                # into wk/wv on the host -> single 32-wide projections, no head slices.
                k = mm(h[s], w_k(l, e)) + b_ref[b_k(l, e)]
                v = mm(h[s], w_v(l, e)) + b_ref[b_v(l, e)]

                # One contraction gives both heads' scores, stacked over sublanes:
                # sc[hh*8 + dst, src] = <q_hh[dst], k_hh[src]> (head mask lives in q).
                sc = lax.dot_general(q_stack[d].astype(bf16), k.astype(bf16),
                                     (((1,), (1,)), ((), ())),
                                     preferred_element_type=f32)        # (16, 8)
                sc = sc + adjb_ref[l * NUM_RELS + e]     # 0 on real edges, -FLT_MAX else
                # edge_softmax per dst per head; masked entries underflow to exactly 0,
                # fully-masked rows (incl. padding) stay 0 via the den clamp.
                m = jnp.maximum(jnp.max(sc, axis=1, keepdims=True), -1e30)
                ex = jnp.exp(sc - m)
                den = jnp.sum(ex, axis=1, keepdims=True)
                attn = ex * pl.reciprocal(jnp.maximum(den, 1e-30), approx=True)
                # One message matmul for both heads; pick each head's lanes back out.
                r = jnp.dot(attn.astype(bf16), v.astype(bf16),
                            preferred_element_type=f32)                 # (16, 32)
                t_msg = jnp.where(head0, r[:N_PAD], r[N_PAD:])
                agg[d].append(t_msg)

            # multi_update_all cross_reducer='mean' + target-specific aggregation
            new_h = [None] * NUM_TYPES
            for t in range(NUM_TYPES):
                parts = agg[t]
                acc = parts[0]
                for p in parts[1:]:
                    acc = acc + p
                acc = acc * (1.0 / float(len(parts)))
                # a_linear (dropout identity) + gated skip + LayerNorm(eps=1e-5)
                trans = mm(acc, w_a(l, t)) + b_ref[b_a(l, t)]
                alpha = alpha_ref[l * NUM_TYPES + t]         # precomputed sigmoid(skip)
                xi = trans * alpha + h[t] * (1.0 - alpha)
                mu = jnp.mean(xi, axis=-1, keepdims=True)
                var = jnp.mean((xi - mu) * (xi - mu), axis=-1, keepdims=True)
                new_h[t] = ((xi - mu) * lax.rsqrt(var + 1e-5) * b_ref[b_g(l, t)]
                            + b_ref[b_be(l, t)])
            h = new_h

        # output head: sigmoid(h[out_key] @ W_out + b_out); single lane-dense store
        logits = jnp.dot(h[out_id].astype(bf16), ow_ref[...],
                         preferred_element_type=f32) + ob_ref[...]
        o_ref[...] = jax.nn.sigmoid(logits)

    return kernel


# ------------------------------ parameter setup ----------------------------------
def init_params(key):
    keys = iter(jax.random.split(key, 256))

    def nxt():
        return next(keys)

    def lin(din, dout):
        w = jax.random.normal(nxt(), (din, dout), jnp.float32) * (1.0 / math.sqrt(din))
        b = jax.random.normal(nxt(), (1, dout), jnp.float32) * 0.01
        return w, b

    params = {}
    params["adapt"] = [lin(n_inp_dict[k], N_HID)
                       for k, _ in sorted(node_dict.items(), key=lambda kv: kv[1])]
    layers = []
    for _ in range(N_LAYERS):
        lp = {"k": [], "q": [], "v": [], "a": [], "ln": []}
        for _t in range(NUM_TYPES):
            lp["k"].append(lin(N_HID, N_HID))
            lp["q"].append(lin(N_HID, N_HID))
            lp["v"].append(lin(N_HID, N_HID))
            lp["a"].append(lin(N_HID, N_HID))
            lp["ln"].append((jnp.ones((1, N_HID), jnp.float32),
                             jnp.zeros((1, N_HID), jnp.float32)))
        bound = math.sqrt(6.0 / (D_K + D_K))           # xavier_uniform
        lp["relation_pri"] = jnp.ones((NUM_RELS, N_HEADS), jnp.float32)
        lp["relation_att"] = jax.random.uniform(
            nxt(), (NUM_RELS, N_HEADS, D_K, D_K), jnp.float32, -bound, bound)
        lp["relation_msg"] = jax.random.uniform(
            nxt(), (NUM_RELS, N_HEADS, D_K, D_K), jnp.float32, -bound, bound)
        lp["skip"] = jnp.ones((NUM_TYPES,), jnp.float32)
        layers.append(lp)
    params["layers"] = layers
    params["out"] = lin(N_HID, N_OUT)
    return params


# ------------------------- host-side folding / forward ---------------------------
def _fold_heads(w, r):
    """Fold per-head (D_K, D_K) relation transforms into a (*, N_HID) weight/bias."""
    return jnp.concatenate(
        [w[:, hh * D_K:(hh + 1) * D_K] @ r[hh] for hh in range(N_HEADS)], axis=1)


def hgt_origin_forward(params, x, blocks, out_key):
    """blocks: list (len N_LAYERS) of dicts etype -> dense [num_dst, num_src] mask."""
    f32 = jnp.float32
    ntypes_sorted = [k for k, _ in sorted(node_dict.items(), key=lambda kv: kv[1])]

    # ---- one-time host-side folding & slab packing (layout plumbing, not compute) ----
    def pad_x(a):
        return jnp.pad(a.astype(f32),
                       ((0, N_PAD - a.shape[0]), (0, N_HID - a.shape[1])))

    def bcast_row(b):
        return jnp.broadcast_to(b.astype(f32).reshape(1, N_HID), (N_PAD, N_HID))

    x_slab = jnp.stack([pad_x(x[nt]) for nt in ntypes_sorted], axis=0)   # (2, 8, 32)

    w_list = [None] * N_W
    b_list = [None] * N_B
    adjb_list = [None] * (N_LAYERS * NUM_RELS)
    alphas = []

    for t, nt in enumerate(ntypes_sorted):
        aw, ab = params["adapt"][t]
        w_list[w_adapt(t)] = jnp.pad(aw, ((0, N_HID - aw.shape[0]), (0, 0)))
        b_list[b_adapt(t)] = bcast_row(ab)

    for l, lp in enumerate(params["layers"]):
        ratt, rmsg, rpri = lp["relation_att"], lp["relation_msg"], lp["relation_pri"]
        adjs = blocks[l]
        for ename, e in sorted(edge_dict.items(), key=lambda kv: kv[1]):
            s = ETYPE_SRC[e]
            wk, bk = lp["k"][s]
            wv, bv = lp["v"][s]
            ratt_scaled = ratt[e] * (rpri[e] / SQRT_DK)[:, None, None]
            w_list[w_k(l, e)] = _fold_heads(wk, ratt_scaled)
            w_list[w_v(l, e)] = _fold_heads(wv, rmsg[e])
            b_list[b_k(l, e)] = bcast_row(_fold_heads(bk, ratt_scaled))
            b_list[b_v(l, e)] = bcast_row(_fold_heads(bv, rmsg[e]))
            a = adjs[ename].astype(f32)
            a = jnp.pad(a, ((0, N_PAD - a.shape[0]), (0, N_PAD - a.shape[1])))
            bias = jnp.where(a > 0.0, 0.0, NEG_INF)            # additive softmax mask
            adjb_list[l * NUM_RELS + e] = jnp.concatenate([bias, bias], axis=0)  # (16, 8)
        for t in range(NUM_TYPES):
            wq, bq = lp["q"][t]
            wa, ba = lp["a"][t]
            g, be = lp["ln"][t]
            w_list[w_q(l, t)] = wq
            w_list[w_a(l, t)] = wa
            b_list[b_q(l, t)] = bcast_row(bq)
            b_list[b_a(l, t)] = bcast_row(ba)
            b_list[b_g(l, t)] = bcast_row(g)
            b_list[b_be(l, t)] = bcast_row(be)
        alphas.append(jax.nn.sigmoid(lp["skip"]))

    w_slab = jnp.stack(w_list, axis=0).astype(jnp.bfloat16)     # (22, 32, 32) bf16
    b_slab = jnp.stack(b_list, axis=0)                          # (30, 8, 32) f32
    adjb_slab = jnp.stack(adjb_list, axis=0)                    # (6, 16, 8) f32
    alpha_smem = jnp.concatenate(alphas, axis=0)                # (N_LAYERS*NUM_TYPES,)

    ow, ob = params["out"]
    ow_pad = jnp.pad(ow, ((0, 0), (0, OUT_PAD - N_OUT))).astype(jnp.bfloat16)
    ob_pad = jnp.broadcast_to(jnp.pad(ob, ((0, 0), (0, OUT_PAD - N_OUT))),
                              (N_PAD, OUT_PAD)).astype(f32)

    # Single fused, gridless kernel (whole working set is a few hundred KiB of VMEM).
    # TODO(synk): for large graphs add a dst-node-tile grid axis with
    # dimension_semantics=("parallel", ...) so v7x's two TensorCores both get work,
    # budgeting tiles against v7x's 64 MiB physical / 32 MiB scoped VMEM.
    out_pad = pl.pallas_call(
        _make_fused_kernel(node_dict[out_key]),
        out_shape=jax.ShapeDtypeStruct((N_PAD, OUT_PAD), jnp.float32),
        in_specs=[pl.BlockSpec(memory_space=VMEM)] * 6
                 + [pl.BlockSpec(memory_space=SMEM)],
        out_specs=pl.BlockSpec(memory_space=VMEM),
    )(x_slab, w_slab, b_slab, adjb_slab, ow_pad, ob_pad, alpha_smem)

    return out_pad[:num_nodes[out_key], :N_OUT].reshape(-1)


# ------------------------------------ main ----------------------------------------
if __name__ == "__main__":
    root = jax.random.PRNGKey(0)
    k_param, k_x_a, k_x_p, k_g0, k_g1, k_g2 = jax.random.split(root, 6)

    params = init_params(k_param)

    # node features
    x = {
        "author": jax.random.normal(k_x_a, (num_nodes["author"], n_inp_dict["author"]), jnp.float32),
        "paper": jax.random.normal(k_x_p, (num_nodes["paper"], n_inp_dict["paper"]), jnp.float32),
    }

    # dense adjacency masks [num_dst, num_src] per etype (same block reused per layer)
    adjs = {
        "cites": (jax.random.uniform(k_g0, (num_nodes["paper"], num_nodes["paper"])) < 0.5
                  ).astype(jnp.float32),
        "writes": (jax.random.uniform(k_g1, (num_nodes["paper"], num_nodes["author"])) < 0.5
                   ).astype(jnp.float32),
        "written_by": (jax.random.uniform(k_g2, (num_nodes["author"], num_nodes["paper"])) < 0.5
                       ).astype(jnp.float32),
    }
    blocks = [adjs for _ in range(N_LAYERS)]

    out = hgt_origin_forward(params, x, blocks, out_key="paper")
    out = jax.block_until_ready(out)
    assert out.shape == (num_nodes["paper"] * N_OUT,)
    assert bool(jnp.all(jnp.isfinite(out)))
    print("KERNEL_OK")
</pallas_src>

<mosaic_0001>
module attributes {stable_mosaic.version = 11 : i64} {
  func.func @kernel(%arg0: memref<2x8x32xf32, #tpu.memory_space<vmem>>, %arg1: memref<22x32x32xbf16, #tpu.memory_space<vmem>>, %arg2: memref<30x8x32xf32, #tpu.memory_space<vmem>>, %arg3: memref<6x16x8xf32, #tpu.memory_space<vmem>>, %arg4: memref<32x128xbf16, #tpu.memory_space<vmem>>, %arg5: memref<8x128xf32, #tpu.memory_space<vmem>>, %arg6: memref<4xf32, #tpu.memory_space<smem>>, %arg7: memref<8x128xf32, #tpu.memory_space<vmem>>) attributes {dimension_semantics = [], scalar_prefetch = 0 : i64, scratch_operands = 0 : i64, tpu.core_type = #tpu.core_type<tc>} {
    %0 = tpu.iota {dimensions = array<i32: 1>} : vector<8x32xi32>
    %c16_i32 = arith.constant 16 : i32
    %1 = vector.broadcast %c16_i32 : i32 to vector<8x32xi32>
    %2 = arith.cmpi slt, %0, %1 : vector<8x32xi32>
    %c0 = arith.constant 0 : index
    %c0_0 = arith.constant 0 : index
    %c0_1 = arith.constant 0 : index
    %3 = vector.load %arg0[%c0, %c0_0, %c0_1] : memref<2x8x32xf32, #tpu.memory_space<vmem>>, vector<1x8x32xf32>
    %4 = vector.shape_cast %3 : vector<1x8x32xf32> to vector<8x32xf32>
    %5 = arith.truncf %4 : vector<8x32xf32> to vector<8x32xbf16>
    %c0_2 = arith.constant 0 : index
    %c0_3 = arith.constant 0 : index
    %c0_4 = arith.constant 0 : index
    %6 = vector.load %arg1[%c0_2, %c0_3, %c0_4] : memref<22x32x32xbf16, #tpu.memory_space<vmem>>, vector<1x32x32xbf16>
    %7 = vector.shape_cast %6 : vector<1x32x32xbf16> to vector<32x32xbf16>
    %cst = arith.constant dense<0.000000e+00> : vector<8x32xf32>
    %8 = tpu.matmul %5, %7, %cst {dimension_numbers = #tpu.dot_dimension_numbers<[1], [0], [0], [1], [0, 0, 1, 1], [], []>} : vector<8x32xbf16>, vector<32x32xbf16>, vector<8x32xf32> -> vector<8x32xf32>
    %c0_5 = arith.constant 0 : index
    %c0_6 = arith.constant 0 : index
    %c0_7 = arith.constant 0 : index
    %9 = vector.load %arg2[%c0_5, %c0_6, %c0_7] : memref<30x8x32xf32, #tpu.memory_space<vmem>>, vector<1x8x32xf32>
    %10 = vector.shape_cast %9 : vector<1x8x32xf32> to vector<8x32xf32>
    %11 = arith.addf %8, %10 : vector<8x32xf32>
    %12 = arith.mulf %11, %11 : vector<8x32xf32>
    %13 = arith.mulf %11, %12 : vector<8x32xf32>
    %cst_8 = arith.constant 4.471500e-02 : f32
    %14 = vector.broadcast %cst_8 : f32 to vector<8x32xf32>
    %15 = arith.mulf %14, %13 : vector<8x32xf32>
    %16 = arith.addf %11, %15 : vector<8x32xf32>
    %cst_9 = arith.constant 0.797884583 : f32
    %17 = vector.broadcast %cst_9 : f32 to vector<8x32xf32>
    %18 = arith.mulf %17, %16 : vector<8x32xf32>
    %19 = math.tanh %18 : vector<8x32xf32>
    %cst_10 = arith.constant 1.000000e+00 : f32
    %20 = vector.broadcast %cst_10 : f32 to vector<8x32xf32>
    %21 = arith.addf %20, %19 : vector<8x32xf32>
    %cst_11 = arith.constant 5.000000e-01 : f32
    %22 = vector.broadcast %cst_11 : f32 to vector<8x32xf32>
    %23 = arith.mulf %22, %21 : vector<8x32xf32>
    %24 = arith.mulf %11, %23 : vector<8x32xf32>
    %c1 = arith.constant 1 : index
    %c0_12 = arith.constant 0 : index
    %c0_13 = arith.constant 0 : index
    %25 = vector.load %arg0[%c1, %c0_12, %c0_13] : memref<2x8x32xf32, #tpu.memory_space<vmem>>, vector<1x8x32xf32>
    %26 = vector.shape_cast %25 : vector<1x8x32xf32> to vector<8x32xf32>
    %27 = arith.truncf %26 : vector<8x32xf32> to vector<8x32xbf16>
    %c1_14 = arith.constant 1 : index
    %c0_15 = arith.constant 0 : index
    %c0_16 = arith.constant 0 : index
    %28 = vector.load %arg1[%c1_14, %c0_15, %c0_16] : memref<22x32x32xbf16, #tpu.memory_space<vmem>>, vector<1x32x32xbf16>
    %29 = vector.shape_cast %28 : vector<1x32x32xbf16> to vector<32x32xbf16>
    %cst_17 = arith.constant dense<0.000000e+00> : vector<8x32xf32>
    %30 = tpu.matmul %27, %29, %cst_17 {dimension_numbers = #tpu.dot_dimension_numbers<[1], [0], [0], [1], [0, 0, 1, 1], [], []>} : vector<8x32xbf16>, vector<32x32xbf16>, vector<8x32xf32> -> vector<8x32xf32>
    %c1_18 = arith.constant 1 : index
    %c0_19 = arith.constant 0 : index
    %c0_20 = arith.constant 0 : index
    %31 = vector.load %arg2[%c1_18, %c0_19, %c0_20] : memref<30x8x32xf32, #tpu.memory_space<vmem>>, vector<1x8x32xf32>
    %32 = vector.shape_cast %31 : vector<1x8x32xf32> to vector<8x32xf32>
    %33 = arith.addf %30, %32 : vector<8x32xf32>
    %34 = arith.mulf %33, %33 : vector<8x32xf32>
    %35 = arith.mulf %33, %34 : vector<8x32xf32>
    %cst_21 = arith.constant 4.471500e-02 : f32
    %36 = vector.broadcast %cst_21 : f32 to vector<8x32xf32>
    %37 = arith.mulf %36, %35 : vector<8x32xf32>
    %38 = arith.addf %33, %37 : vector<8x32xf32>
    %cst_22 = arith.constant 0.797884583 : f32
    %39 = vector.broadcast %cst_22 : f32 to vector<8x32xf32>
    %40 = arith.mulf %39, %38 : vector<8x32xf32>
    %41 = math.tanh %40 : vector<8x32xf32>
    %cst_23 = arith.constant 1.000000e+00 : f32
    %42 = vector.broadcast %cst_23 : f32 to vector<8x32xf32>
    %43 = arith.addf %42, %41 : vector<8x32xf32>
    %cst_24 = arith.constant 5.000000e-01 : f32
    %44 = vector.broadcast %cst_24 : f32 to vector<8x32xf32>
    %45 = arith.mulf %44, %43 : vector<8x32xf32>
    %46 = arith.mulf %33, %45 : vector<8x32xf32>
    %47 = arith.truncf %24 : vector<8x32xf32> to vector<8x32xbf16>
    %c8 = arith.constant 8 : index
    %c0_25 = arith.constant 0 : index
    %c0_26 = arith.constant 0 : index
    %48 = vector.load %arg1[%c8, %c0_25, %c0_26] : memref<22x32x32xbf16, #tpu.memory_space<vmem>>, vector<1x32x32xbf16>
    %49 = vector.shape_cast %48 : vector<1x32x32xbf16> to vector<32x32xbf16>
    %cst_27 = arith.constant dense<0.000000e+00> : vector<8x32xf32>
    %50 = tpu.matmul %47, %49, %cst_27 {dimension_numbers = #tpu.dot_dimension_numbers<[1], [0], [0], [1], [0, 0, 1, 1], [], []>} : vector<8x32xbf16>, vector<32x32xbf16>, vector<8x32xf32> -> vector<8x32xf32>
    %c8_28 = arith.constant 8 : index
    %c0_29 = arith.constant 0 : index
    %c0_30 = arith.constant 0 : index
    %51 = vector.load %arg2[%c8_28, %c0_29, %c0_30] : memref<30x8x32xf32, #tpu.memory_space<vmem>>, vector<1x8x32xf32>
    %52 = vector.shape_cast %51 : vector<1x8x32xf32> to vector<8x32xf32>
    %53 = arith.addf %50, %52 : vector<8x32xf32>
    %cst_31 = arith.constant 0.000000e+00 : f32
    %54 = vector.broadcast %cst_31 : f32 to vector<8x32xf32>
    %55 = arith.select %2, %53, %54 : vector<8x32xi1>, vector<8x32xf32>
    %cst_32 = arith.constant 0.000000e+00 : f32
    %56 = vector.broadcast %cst_32 : f32 to vector<8x32xf32>
    %57 = arith.select %2, %56, %53 : vector<8x32xi1>, vector<8x32xf32>
    %58 = tpu.concatenate %55, %57 in 0 : vector<8x32xf32>, vector<8x32xf32> -> vector<16x32xf32>
    %59 = arith.truncf %46 : vector<8x32xf32> to vector<8x32xbf16>
    %c10 = arith.constant 10 : index
    %c0_33 = arith.constant 0 : index
    %c0_34 = arith.constant 0 : index
    %60 = vector.load %arg1[%c10, %c0_33, %c0_34] : memref<22x32x32xbf16, #tpu.memory_space<vmem>>, vector<1x32x32xbf16>
    %61 = vector.shape_cast %60 : vector<1x32x32xbf16> to vector<32x32xbf16>
    %cst_35 = arith.constant dense<0.000000e+00> : vector<8x32xf32>
    %62 = tpu.matmul %59, %61, %cst_35 {dimension_numbers = #tpu.dot_dimension_numbers<[1], [0], [0], [1], [0, 0, 1, 1], [], []>} : vector<8x32xbf16>, vector<32x32xbf16>, vector<8x32xf32> -> vector<8x32xf32>
    %c12 = arith.constant 12 : index
    %c0_36 = arith.constant 0 : index
    %c0_37 = arith.constant 0 : index
    %63 = vector.load %arg2[%c12, %c0_36, %c0_37] : memref<30x8x32xf32, #tpu.memory_space<vmem>>, vector<1x8x32xf32>
    %64 = vector.shape_cast %63 : vector<1x8x32xf32> to vector<8x32xf32>
    %65 = arith.addf %62, %64 : vector<8x32xf32>
    %cst_38 = arith.constant 0.000000e+00 : f32
    %66 = vector.broadcast %cst_38 : f32 to vector<8x32xf32>
    %67 = arith.select %2, %65, %66 : vector<8x32xi1>, vector<8x32xf32>
    %cst_39 = arith.constant 0.000000e+00 : f32
    %68 = vector.broadcast %cst_39 : f32 to vector<8x32xf32>
    %69 = arith.select %2, %68, %65 : vector<8x32xi1>, vector<8x32xf32>
    %70 = tpu.concatenate %67, %69 in 0 : vector<8x32xf32>, vector<8x32xf32> -> vector<16x32xf32>
    %71 = arith.truncf %46 : vector<8x32xf32> to vector<8x32xbf16>
    %c2 = arith.constant 2 : index
    %c0_40 = arith.constant 0 : index
    %c0_41 = arith.constant 0 : index
    %72 = vector.load %arg1[%c2, %c0_40, %c0_41] : memref<22x32x32xbf16, #tpu.memory_space<vmem>>, vector<1x32x32xbf16>
    %73 = vector.shape_cast %72 : vector<1x32x32xbf16> to vector<32x32xbf16>
    %cst_42 = arith.constant dense<0.000000e+00> : vector<8x32xf32>
    %74 = tpu.matmul %71, %73, %cst_42 {dimension_numbers = #tpu.dot_dimension_numbers<[1], [0], [0], [1], [0, 0, 1, 1], [], []>} : vector<8x32xbf16>, vector<32x32xbf16>, vector<8x32xf32> -> vector<8x32xf32>
    %c2_43 = arith.constant 2 : index
    %c0_44 = arith.constant 0 : index
    %c0_45 = arith.constant 0 : index
    %75 = vector.load %arg2[%c2_43, %c0_44, %c0_45] : memref<30x8x32xf32, #tpu.memory_space<vmem>>, vector<1x8x32xf32>
    %76 = vector.shape_cast %75 : vector<1x8x32xf32> to vector<8x32xf32>
    %77 = arith.addf %74, %76 : vector<8x32xf32>
    %78 = arith.truncf %46 : vector<8x32xf32> to vector<8x32xbf16>
    %c3 = arith.constant 3 : index
    %c0_46 = arith.constant 0 : index
    %c0_47 = arith.constant 0 : index
    %79 = vector.load %arg1[%c3, %c0_46, %c0_47] : memref<22x32x32xbf16, #tpu.memory_space<vmem>>, vector<1x32x32xbf16>
    %80 = vector.shape_cast %79 : vector<1x32x32xbf16> to vector<32x32xbf16>
    %cst_48 = arith.constant dense<0.000000e+00> : vector<8x32xf32>
    %81 = tpu.matmul %78, %80, %cst_48 {dimension_numbers = #tpu.dot_dimension_numbers<[1], [0], [0], [1], [0, 0, 1, 1], [], []>} : vector<8x32xbf16>, vector<32x32xbf16>, vector<8x32xf32> -> vector<8x32xf32>
    %c3_49 = arith.constant 3 : index
    %c0_50 = arith.constant 0 : index
    %c0_51 = arith.constant 0 : index
    %82 = vector.load %arg2[%c3_49, %c0_50, %c0_51] : memref<30x8x32xf32, #tpu.memory_space<vmem>>, vector<1x8x32xf32>
    %83 = vector.shape_cast %82 : vector<1x8x32xf32> to vector<8x32xf32>
    %84 = arith.addf %81, %83 : vector<8x32xf32>
    %85 = arith.truncf %70 : vector<16x32xf32> to vector<16x32xbf16>
    %86 = arith.truncf %77 : vector<8x32xf32> to vector<8x32xbf16>
    %cst_52 = arith.constant dense<0.000000e+00> : vector<16x8xf32>
    %87 = tpu.matmul %85, %86, %cst_52 {dimension_numbers = #tpu.dot_dimension_numbers<[1], [1], [0], [0], [0, 0, 1, 0], [], []>} : vector<16x32xbf16>, vector<8x32xbf16>, vector<16x8xf32> -> vector<16x8xf32>
    %c0_53 = arith.constant 0 : index
    %c0_54 = arith.constant 0 : index
    %c0_55 = arith.constant 0 : index
    %88 = vector.load %arg3[%c0_53, %c0_54, %c0_55] : memref<6x16x8xf32, #tpu.memory_space<vmem>>, vector<1x16x8xf32>
    %89 = vector.shape_cast %88 : vector<1x16x8xf32> to vector<16x8xf32>
    %90 = arith.addf %87, %89 : vector<16x8xf32>
    %cst_56 = arith.constant dense<0xFF800000> : vector<16xf32>
    %91 = vector.multi_reduction <maximumf>, %90, %cst_56 [1] : vector<16x8xf32> to vector<16xf32>
    %92 = vector.shape_cast %91 : vector<16xf32> to vector<16x1xf32>
    %cst_57 = arith.constant -1.000000e+30 : f32
    %93 = vector.broadcast %cst_57 : f32 to vector<16x1xf32>
    %94 = arith.maximumf %92, %93 : vector<16x1xf32>
    %95 = vector.broadcast %94 : vector<16x1xf32> to vector<16x8xf32>
    %96 = arith.subf %90, %95 : vector<16x8xf32>
    %97 = math.exp %96 : vector<16x8xf32>
    %cst_58 = arith.constant dense<0.000000e+00> : vector<16xf32>
    %98 = vector.multi_reduction <add>, %97, %cst_58 [1] : vector<16x8xf32> to vector<16xf32>
    %99 = vector.shape_cast %98 : vector<16xf32> to vector<16x1xf32>
    %cst_59 = arith.constant 1.000000e-30 : f32
    %100 = vector.broadcast %cst_59 : f32 to vector<16x1xf32>
    %101 = arith.maximumf %99, %100 : vector<16x1xf32>
    %102 = tpu.reciprocal %101 {approx = true} : vector<16x1xf32> -> vector<16x1xf32>
    %103 = vector.broadcast %102 : vector<16x1xf32> to vector<16x8xf32>
    %104 = arith.mulf %97, %103 : vector<16x8xf32>
    %105 = arith.truncf %104 : vector<16x8xf32> to vector<16x8xbf16>
    %106 = arith.truncf %84 : vector<8x32xf32> to vector<8x32xbf16>
    %cst_60 = arith.constant dense<0.000000e+00> : vector<16x32xf32>
    %107 = tpu.matmul %105, %106, %cst_60 {dimension_numbers = #tpu.dot_dimension_numbers<[1], [0], [0], [1], [0, 0, 1, 1], [], []>} : vector<16x8xbf16>, vector<8x32xbf16>, vector<16x32xf32> -> vector<16x32xf32>
    %108 = vector.extract_strided_slice %107 {offsets = [0, 0], sizes = [8, 32], strides = [1, 1]} : vector<16x32xf32> to vector<8x32xf32>
    %109 = vector.extract_strided_slice %107 {offsets = [8, 0], sizes = [8, 32], strides = [1, 1]} : vector<16x32xf32> to vector<8x32xf32>
    %110 = arith.select %2, %108, %109 : vector<8x32xi1>, vector<8x32xf32>
    %111 = arith.truncf %24 : vector<8x32xf32> to vector<8x32xbf16>
    %c4 = arith.constant 4 : index
    %c0_61 = arith.constant 0 : index
    %c0_62 = arith.constant 0 : index
    %112 = vector.load %arg1[%c4, %c0_61, %c0_62] : memref<22x32x32xbf16, #tpu.memory_space<vmem>>, vector<1x32x32xbf16>
    %113 = vector.shape_cast %112 : vector<1x32x32xbf16> to vector<32x32xbf16>
    %cst_63 = arith.constant dense<0.000000e+00> : vector<8x32xf32>
    %114 = tpu.matmul %111, %113, %cst_63 {dimension_numbers = #tpu.dot_dimension_numbers<[1], [0], [0], [1], [0, 0, 1, 1], [], []>} : vector<8x32xbf16>, vector<32x32xbf16>, vector<8x32xf32> -> vector<8x32xf32>
    %c4_64 = arith.constant 4 : index
    %c0_65 = arith.constant 0 : index
    %c0_66 = arith.constant 0 : index
    %115 = vector.load %arg2[%c4_64, %c0_65, %c0_66] : memref<30x8x32xf32, #tpu.memory_space<vmem>>, vector<1x8x32xf32>
    %116 = vector.shape_cast %115 : vector<1x8x32xf32> to vector<8x32xf32>
    %117 = arith.addf %114, %116 : vector<8x32xf32>
    %118 = arith.truncf %24 : vector<8x32xf32> to vector<8x32xbf16>
    %c5 = arith.constant 5 : index
    %c0_67 = arith.constant 0 : index
    %c0_68 = arith.constant 0 : index
    %119 = vector.load %arg1[%c5, %c0_67, %c0_68] : memref<22x32x32xbf16, #tpu.memory_space<vmem>>, vector<1x32x32xbf16>
    %120 = vector.shape_cast %119 : vector<1x32x32xbf16> to vector<32x32xbf16>
    %cst_69 = arith.constant dense<0.000000e+00> : vector<8x32xf32>
    %121 = tpu.matmul %118, %120, %cst_69 {dimension_numbers = #tpu.dot_dimension_numbers<[1], [0], [0], [1], [0, 0, 1, 1], [], []>} : vector<8x32xbf16>, vector<32x32xbf16>, vector<8x32xf32> -> vector<8x32xf32>
    %c5_70 = arith.constant 5 : index
    %c0_71 = arith.constant 0 : index
    %c0_72 = arith.constant 0 : index
    %122 = vector.load %arg2[%c5_70, %c0_71, %c0_72] : memref<30x8x32xf32, #tpu.memory_space<vmem>>, vector<1x8x32xf32>
    %123 = vector.shape_cast %122 : vector<1x8x32xf32> to vector<8x32xf32>
    %124 = arith.addf %121, %123 : vector<8x32xf32>
    %125 = arith.truncf %70 : vector<16x32xf32> to vector<16x32xbf16>
    %126 = arith.truncf %117 : vector<8x32xf32> to vector<8x32xbf16>
    %cst_73 = arith.constant dense<0.000000e+00> : vector<16x8xf32>
    %127 = tpu.matmul %125, %126, %cst_73 {dimension_numbers = #tpu.dot_dimension_numbers<[1], [1], [0], [0], [0, 0, 1, 0], [], []>} : vector<16x32xbf16>, vector<8x32xbf16>, vector<16x8xf32> -> vector<16x8xf32>
    %c1_74 = arith.constant 1 : index
    %c0_75 = arith.constant 0 : index
    %c0_76 = arith.constant 0 : index
    %128 = vector.load %arg3[%c1_74, %c0_75, %c0_76] : memref<6x16x8xf32, #tpu.memory_space<vmem>>, vector<1x16x8xf32>
    %129 = vector.shape_cast %128 : vector<1x16x8xf32> to vector<16x8xf32>
    %130 = arith.addf %127, %129 : vector<16x8xf32>
    %cst_77 = arith.constant dense<0xFF800000> : vector<16xf32>
    %131 = vector.multi_reduction <maximumf>, %130, %cst_77 [1] : vector<16x8xf32> to vector<16xf32>
    %132 = vector.shape_cast %131 : vector<16xf32> to vector<16x1xf32>
    %cst_78 = arith.constant -1.000000e+30 : f32
    %133 = vector.broadcast %cst_78 : f32 to vector<16x1xf32>
    %134 = arith.maximumf %132, %133 : vector<16x1xf32>
    %135 = vector.broadcast %134 : vector<16x1xf32> to vector<16x8xf32>
    %136 = arith.subf %130, %135 : vector<16x8xf32>
    %137 = math.exp %136 : vector<16x8xf32>
    %cst_79 = arith.constant dense<0.000000e+00> : vector<16xf32>
    %138 = vector.multi_reduction <add>, %137, %cst_79 [1] : vector<16x8xf32> to vector<16xf32>
    %139 = vector.shape_cast %138 : vector<16xf32> to vector<16x1xf32>
    %cst_80 = arith.constant 1.000000e-30 : f32
    %140 = vector.broadcast %cst_80 : f32 to vector<16x1xf32>
    %141 = arith.maximumf %139, %140 : vector<16x1xf32>
    %142 = tpu.reciprocal %141 {approx = true} : vector<16x1xf32> -> vector<16x1xf32>
    %143 = vector.broadcast %142 : vector<16x1xf32> to vector<16x8xf32>
    %144 = arith.mulf %137, %143 : vector<16x8xf32>
    %145 = arith.truncf %144 : vector<16x8xf32> to vector<16x8xbf16>
    %146 = arith.truncf %124 : vector<8x32xf32> to vector<8x32xbf16>
    %cst_81 = arith.constant dense<0.000000e+00> : vector<16x32xf32>
    %147 = tpu.matmul %145, %146, %cst_81 {dimension_numbers = #tpu.dot_dimension_numbers<[1], [0], [0], [1], [0, 0, 1, 1], [], []>} : vector<16x8xbf16>, vector<8x32xbf16>, vector<16x32xf32> -> vector<16x32xf32>
    %148 = vector.extract_strided_slice %147 {offsets = [0, 0], sizes = [8, 32], strides = [1, 1]} : vector<16x32xf32> to vector<8x32xf32>
    %149 = vector.extract_strided_slice %147 {offsets = [8, 0], sizes = [8, 32], strides = [1, 1]} : vector<16x32xf32> to vector<8x32xf32>
    %150 = arith.select %2, %148, %149 : vector<8x32xi1>, vector<8x32xf32>
    %151 = arith.truncf %46 : vector<8x32xf32> to vector<8x32xbf16>
    %c6 = arith.constant 6 : index
    %c0_82 = arith.constant 0 : index
    %c0_83 = arith.constant 0 : index
    %152 = vector.load %arg1[%c6, %c0_82, %c0_83] : memref<22x32x32xbf16, #tpu.memory_space<vmem>>, vector<1x32x32xbf16>
    %153 = vector.shape_cast %152 : vector<1x32x32xbf16> to vector<32x32xbf16>
    %cst_84 = arith.constant dense<0.000000e+00> : vector<8x32xf32>
    %154 = tpu.matmul %151, %153, %cst_84 {dimension_numbers = #tpu.dot_dimension_numbers<[1], [0], [0], [1], [0, 0, 1, 1], [], []>} : vector<8x32xbf16>, vector<32x32xbf16>, vector<8x32xf32> -> vector<8x32xf32>
    %c6_85 = arith.constant 6 : index
    %c0_86 = arith.constant 0 : index
    %c0_87 = arith.constant 0 : index
    %155 = vector.load %arg2[%c6_85, %c0_86, %c0_87] : memref<30x8x32xf32, #tpu.memory_space<vmem>>, vector<1x8x32xf32>
    %156 = vector.shape_cast %155 : vector<1x8x32xf32> to vector<8x32xf32>
    %157 = arith.addf %154, %156 : vector<8x32xf32>
    %158 = arith.truncf %46 : vector<8x32xf32> to vector<8x32xbf16>
    %c7 = arith.constant 7 : index
    %c0_88 = arith.constant 0 : index
    %c0_89 = arith.constant 0 : index
    %159 = vector.load %arg1[%c7, %c0_88, %c0_89] : memref<22x32x32xbf16, #tpu.memory_space<vmem>>, vector<1x32x32xbf16>
    %160 = vector.shape_cast %159 : vector<1x32x32xbf16> to vector<32x32xbf16>
    %cst_90 = arith.constant dense<0.000000e+00> : vector<8x32xf32>
    %161 = tpu.matmul %158, %160, %cst_90 {dimension_numbers = #tpu.dot_dimension_numbers<[1], [0], [0], [1], [0, 0, 1, 1], [], []>} : vector<8x32xbf16>, vector<32x32xbf16>, vector<8x32xf32> -> vector<8x32xf32>
    %c7_91 = arith.constant 7 : index
    %c0_92 = arith.constant 0 : index
    %c0_93 = arith.constant 0 : index
    %162 = vector.load %arg2[%c7_91, %c0_92, %c0_93] : memref<30x8x32xf32, #tpu.memory_space<vmem>>, vector<1x8x32xf32>
    %163 = vector.shape_cast %162 : vector<1x8x32xf32> to vector<8x32xf32>
    %164 = arith.addf %161, %163 : vector<8x32xf32>
    %165 = arith.truncf %58 : vector<16x32xf32> to vector<16x32xbf16>
    %166 = arith.truncf %157 : vector<8x32xf32> to vector<8x32xbf16>
    %cst_94 = arith.constant dense<0.000000e+00> : vector<16x8xf32>
    %167 = tpu.matmul %165, %166, %cst_94 {dimension_numbers = #tpu.dot_dimension_numbers<[1], [1], [0], [0], [0, 0, 1, 0], [], []>} : vector<16x32xbf16>, vector<8x32xbf16>, vector<16x8xf32> -> vector<16x8xf32>
    %c2_95 = arith.constant 2 : index
    %c0_96 = arith.constant 0 : index
    %c0_97 = arith.constant 0 : index
    %168 = vector.load %arg3[%c2_95, %c0_96, %c0_97] : memref<6x16x8xf32, #tpu.memory_space<vmem>>, vector<1x16x8xf32>
    %169 = vector.shape_cast %168 : vector<1x16x8xf32> to vector<16x8xf32>
    %170 = arith.addf %167, %169 : vector<16x8xf32>
    %cst_98 = arith.constant dense<0xFF800000> : vector<16xf32>
    %171 = vector.multi_reduction <maximumf>, %170, %cst_98 [1] : vector<16x8xf32> to vector<16xf32>
    %172 = vector.shape_cast %171 : vector<16xf32> to vector<16x1xf32>
    %cst_99 = arith.constant -1.000000e+30 : f32
    %173 = vector.broadcast %cst_99 : f32 to vector<16x1xf32>
    %174 = arith.maximumf %172, %173 : vector<16x1xf32>
    %175 = vector.broadcast %174 : vector<16x1xf32> to vector<16x8xf32>
    %176 = arith.subf %170, %175 : vector<16x8xf32>
    %177 = math.exp %176 : vector<16x8xf32>
    %cst_100 = arith.constant dense<0.000000e+00> : vector<16xf32>
    %178 = vector.multi_reduction <add>, %177, %cst_100 [1] : vector<16x8xf32> to vector<16xf32>
    %179 = vector.shape_cast %178 : vector<16xf32> to vector<16x1xf32>
    %cst_101 = arith.constant 1.000000e-30 : f32
    %180 = vector.broadcast %cst_101 : f32 to vector<16x1xf32>
    %181 = arith.maximumf %179, %180 : vector<16x1xf32>
    %182 = tpu.reciprocal %181 {approx = true} : vector<16x1xf32> -> vector<16x1xf32>
    %183 = vector.broadcast %182 : vector<16x1xf32> to vector<16x8xf32>
    %184 = arith.mulf %177, %183 : vector<16x8xf32>
    %185 = arith.truncf %184 : vector<16x8xf32> to vector<16x8xbf16>
    %186 = arith.truncf %164 : vector<8x32xf32> to vector<8x32xbf16>
    %cst_102 = arith.constant dense<0.000000e+00> : vector<16x32xf32>
    %187 = tpu.matmul %185, %186, %cst_102 {dimension_numbers = #tpu.dot_dimension_numbers<[1], [0], [0], [1], [0, 0, 1, 1], [], []>} : vector<16x8xbf16>, vector<8x32xbf16>, vector<16x32xf32> -> vector<16x32xf32>
    %188 = vector.extract_strided_slice %187 {offsets = [0, 0], sizes = [8, 32], strides = [1, 1]} : vector<16x32xf32> to vector<8x32xf32>
    %189 = vector.extract_strided_slice %187 {offsets = [8, 0], sizes = [8, 32], strides = [1, 1]} : vector<16x32xf32> to vector<8x32xf32>
    %190 = arith.select %2, %188, %189 : vector<8x32xi1>, vector<8x32xf32>
    %cst_103 = arith.constant 1.000000e+00 : f32
    %191 = vector.broadcast %cst_103 : f32 to vector<8x32xf32>
    %192 = arith.mulf %190, %191 : vector<8x32xf32>
    %193 = arith.truncf %192 : vector<8x32xf32> to vector<8x32xbf16>
    %c9 = arith.constant 9 : index
    %c0_104 = arith.constant 0 : index
    %c0_105 = arith.constant 0 : index
    %194 = vector.load %arg1[%c9, %c0_104, %c0_105] : memref<22x32x32xbf16, #tpu.memory_space<vmem>>, vector<1x32x32xbf16>
    %195 = vector.shape_cast %194 : vector<1x32x32xbf16> to vector<32x32xbf16>
    %cst_106 = arith.constant dense<0.000000e+00> : vector<8x32xf32>
    %196 = tpu.matmul %193, %195, %cst_106 {dimension_numbers = #tpu.dot_dimension_numbers<[1], [0], [0], [1], [0, 0, 1, 1], [], []>} : vector<8x32xbf16>, vector<32x32xbf16>, vector<8x32xf32> -> vector<8x32xf32>
    %c9_107 = arith.constant 9 : index
    %c0_108 = arith.constant 0 : index
    %c0_109 = arith.constant 0 : index
    %197 = vector.load %arg2[%c9_107, %c0_108, %c0_109] : memref<30x8x32xf32, #tpu.memory_space<vmem>>, vector<1x8x32xf32>
    %198 = vector.shape_cast %197 : vector<1x8x32xf32> to vector<8x32xf32>
    %199 = arith.addf %196, %198 : vector<8x32xf32>
    %c0_110 = arith.constant 0 : index
    %200 = memref.load %arg6[%c0_110] : memref<4xf32, #tpu.memory_space<smem>>
    %201 = vector.broadcast %200 : f32 to vector<8x32xf32>
    %202 = arith.mulf %199, %201 : vector<8x32xf32>
    %cst_111 = arith.constant 1.000000e+00 : f32
    %203 = arith.subf %cst_111, %200 : f32
    %204 = vector.broadcast %203 : f32 to vector<8x32xf32>
    %205 = arith.mulf %24, %204 : vector<8x32xf32>
    %206 = arith.addf %202, %205 : vector<8x32xf32>
    %cst_112 = arith.constant dense<0.000000e+00> : vector<8xf32>
    %207 = vector.multi_reduction <add>, %206, %cst_112 [1] : vector<8x32xf32> to vector<8xf32>
    %208 = vector.shape_cast %207 : vector<8xf32> to vector<8x1xf32>
    %cst_113 = arith.constant 3.200000e+01 : f32
    %209 = vector.broadcast %cst_113 : f32 to vector<8x1xf32>
    %210 = arith.divf %208, %209 : vector<8x1xf32>
    %211 = vector.broadcast %210 : vector<8x1xf32> to vector<8x32xf32>
    %212 = arith.subf %206, %211 : vector<8x32xf32>
    %213 = vector.broadcast %210 : vector<8x1xf32> to vector<8x32xf32>
    %214 = arith.subf %206, %213 : vector<8x32xf32>
    %215 = arith.mulf %212, %214 : vector<8x32xf32>
    %cst_114 = arith.constant dense<0.000000e+00> : vector<8xf32>
    %216 = vector.multi_reduction <add>, %215, %cst_114 [1] : vector<8x32xf32> to vector<8xf32>
    %217 = vector.shape_cast %216 : vector<8xf32> to vector<8x1xf32>
    %cst_115 = arith.constant 3.200000e+01 : f32
    %218 = vector.broadcast %cst_115 : f32 to vector<8x1xf32>
    %219 = arith.divf %217, %218 : vector<8x1xf32>
    %220 = vector.broadcast %210 : vector<8x1xf32> to vector<8x32xf32>
    %221 = arith.subf %206, %220 : vector<8x32xf32>
    %cst_116 = arith.constant 9.99999974E-6 : f32
    %222 = vector.broadcast %cst_116 : f32 to vector<8x1xf32>
    %223 = arith.addf %219, %222 : vector<8x1xf32>
    %224 = math.rsqrt %223 : vector<8x1xf32>
    %225 = vector.broadcast %224 : vector<8x1xf32> to vector<8x32xf32>
    %226 = arith.mulf %221, %225 : vector<8x32xf32>
    %c10_117 = arith.constant 10 : index
    %c0_118 = arith.constant 0 : index
    %c0_119 = arith.constant 0 : index
    %227 = vector.load %arg2[%c10_117, %c0_118, %c0_119] : memref<30x8x32xf32, #tpu.memory_space<vmem>>, vector<1x8x32xf32>
    %228 = vector.shape_cast %227 : vector<1x8x32xf32> to vector<8x32xf32>
    %229 = arith.mulf %226, %228 : vector<8x32xf32>
    %c11 = arith.constant 11 : index
    %c0_120 = arith.constant 0 : index
    %c0_121 = arith.constant 0 : index
    %230 = vector.load %arg2[%c11, %c0_120, %c0_121] : memref<30x8x32xf32, #tpu.memory_space<vmem>>, vector<1x8x32xf32>
    %231 = vector.shape_cast %230 : vector<1x8x32xf32> to vector<8x32xf32>
    %232 = arith.addf %229, %231 : vector<8x32xf32>
    %233 = arith.addf %110, %150 : vector<8x32xf32>
    %cst_122 = arith.constant 5.000000e-01 : f32
    %234 = vector.broadcast %cst_122 : f32 to vector<8x32xf32>
    %235 = arith.mulf %233, %234 : vector<8x32xf32>
    %236 = arith.truncf %235 : vector<8x32xf32> to vector<8x32xbf16>
    %c11_123 = arith.constant 11 : index
    %c0_124 = arith.constant 0 : index
    %c0_125 = arith.constant 0 : index
    %237 = vector.load %arg1[%c11_123, %c0_124, %c0_125] : memref<22x32x32xbf16, #tpu.memory_space<vmem>>, vector<1x32x32xbf16>
    %238 = vector.shape_cast %237 : vector<1x32x32xbf16> to vector<32x32xbf16>
    %cst_126 = arith.constant dense<0.000000e+00> : vector<8x32xf32>
    %239 = tpu.matmul %236, %238, %cst_126 {dimension_numbers = #tpu.dot_dimension_numbers<[1], [0], [0], [1], [0, 0, 1, 1], [], []>} : vector<8x32xbf16>, vector<32x32xbf16>, vector<8x32xf32> -> vector<8x32xf32>
    %c13 = arith.constant 13 : index
    %c0_127 = arith.constant 0 : index
    %c0_128 = arith.constant 0 : index
    %240 = vector.load %arg2[%c13, %c0_127, %c0_128] : memref<30x8x32xf32, #tpu.memory_space<vmem>>, vector<1x8x32xf32>
    %241 = vector.shape_cast %240 : vector<1x8x32xf32> to vector<8x32xf32>
    %242 = arith.addf %239, %241 : vector<8x32xf32>
    %c1_129 = arith.constant 1 : index
    %243 = memref.load %arg6[%c1_129] : memref<4xf32, #tpu.memory_space<smem>>
    %244 = vector.broadcast %243 : f32 to vector<8x32xf32>
    %245 = arith.mulf %242, %244 : vector<8x32xf32>
    %cst_130 = arith.constant 1.000000e+00 : f32
    %246 = arith.subf %cst_130, %243 : f32
    %247 = vector.broadcast %246 : f32 to vector<8x32xf32>
    %248 = arith.mulf %46, %247 : vector<8x32xf32>
    %249 = arith.addf %245, %248 : vector<8x32xf32>
    %cst_131 = arith.constant dense<0.000000e+00> : vector<8xf32>
    %250 = vector.multi_reduction <add>, %249, %cst_131 [1] : vector<8x32xf32> to vector<8xf32>
    %251 = vector.shape_cast %250 : vector<8xf32> to vector<8x1xf32>
    %cst_132 = arith.constant 3.200000e+01 : f32
    %252 = vector.broadcast %cst_132 : f32 to vector<8x1xf32>
    %253 = arith.divf %251, %252 : vector<8x1xf32>
    %254 = vector.broadcast %253 : vector<8x1xf32> to vector<8x32xf32>
    %255 = arith.subf %249, %254 : vector<8x32xf32>
    %256 = vector.broadcast %253 : vector<8x1xf32> to vector<8x32xf32>
    %257 = arith.subf %249, %256 : vector<8x32xf32>
    %258 = arith.mulf %255, %257 : vector<8x32xf32>
    %cst_133 = arith.constant dense<0.000000e+00> : vector<8xf32>
    %259 = vector.multi_reduction <add>, %258, %cst_133 [1] : vector<8x32xf32> to vector<8xf32>
    %260 = vector.shape_cast %259 : vector<8xf32> to vector<8x1xf32>
    %cst_134 = arith.constant 3.200000e+01 : f32
    %261 = vector.broadcast %cst_134 : f32 to vector<8x1xf32>
    %262 = arith.divf %260, %261 : vector<8x1xf32>
    %263 = vector.broadcast %253 : vector<8x1xf32> to vector<8x32xf32>
    %264 = arith.subf %249, %263 : vector<8x32xf32>
    %cst_135 = arith.constant 9.99999974E-6 : f32
    %265 = vector.broadcast %cst_135 : f32 to vector<8x1xf32>
    %266 = arith.addf %262, %265 : vector<8x1xf32>
    %267 = math.rsqrt %266 : vector<8x1xf32>
    %268 = vector.broadcast %267 : vector<8x1xf32> to vector<8x32xf32>
    %269 = arith.mulf %264, %268 : vector<8x32xf32>
    %c14 = arith.constant 14 : index
    %c0_136 = arith.constant 0 : index
    %c0_137 = arith.constant 0 : index
    %270 = vector.load %arg2[%c14, %c0_136, %c0_137] : memref<30x8x32xf32, #tpu.memory_space<vmem>>, vector<1x8x32xf32>
    %271 = vector.shape_cast %270 : vector<1x8x32xf32> to vector<8x32xf32>
    %272 = arith.mulf %269, %271 : vector<8x32xf32>
    %c15 = arith.constant 15 : index
    %c0_138 = arith.constant 0 : index
    %c0_139 = arith.constant 0 : index
    %273 = vector.load %arg2[%c15, %c0_138, %c0_139] : memref<30x8x32xf32, #tpu.memory_space<vmem>>, vector<1x8x32xf32>
    %274 = vector.shape_cast %273 : vector<1x8x32xf32> to vector<8x32xf32>
    %275 = arith.addf %272, %274 : vector<8x32xf32>
    %276 = arith.truncf %275 : vector<8x32xf32> to vector<8x32xbf16>
    %c20 = arith.constant 20 : index
    %c0_140 = arith.constant 0 : index
    %c0_141 = arith.constant 0 : index
    %277 = vector.load %arg1[%c20, %c0_140, %c0_141] : memref<22x32x32xbf16, #tpu.memory_space<vmem>>, vector<1x32x32xbf16>
    %278 = vector.shape_cast %277 : vector<1x32x32xbf16> to vector<32x32xbf16>
    %cst_142 = arith.constant dense<0.000000e+00> : vector<8x32xf32>
    %279 = tpu.matmul %276, %278, %cst_142 {dimension_numbers = #tpu.dot_dimension_numbers<[1], [0], [0], [1], [0, 0, 1, 1], [], []>} : vector<8x32xbf16>, vector<32x32xbf16>, vector<8x32xf32> -> vector<8x32xf32>
    %c26 = arith.constant 26 : index
    %c0_143 = arith.constant 0 : index
    %c0_144 = arith.constant 0 : index
    %280 = vector.load %arg2[%c26, %c0_143, %c0_144] : memref<30x8x32xf32, #tpu.memory_space<vmem>>, vector<1x8x32xf32>
    %281 = vector.shape_cast %280 : vector<1x8x32xf32> to vector<8x32xf32>
    %282 = arith.addf %279, %281 : vector<8x32xf32>
    %cst_145 = arith.constant 0.000000e+00 : f32
    %283 = vector.broadcast %cst_145 : f32 to vector<8x32xf32>
    %284 = arith.select %2, %282, %283 : vector<8x32xi1>, vector<8x32xf32>
    %cst_146 = arith.constant 0.000000e+00 : f32
    %285 = vector.broadcast %cst_146 : f32 to vector<8x32xf32>
    %286 = arith.select %2, %285, %282 : vector<8x32xi1>, vector<8x32xf32>
    %287 = tpu.concatenate %284, %286 in 0 : vector<8x32xf32>, vector<8x32xf32> -> vector<16x32xf32>
    %288 = arith.truncf %275 : vector<8x32xf32> to vector<8x32xbf16>
    %c12_147 = arith.constant 12 : index
    %c0_148 = arith.constant 0 : index
    %c0_149 = arith.constant 0 : index
    %289 = vector.load %arg1[%c12_147, %c0_148, %c0_149] : memref<22x32x32xbf16, #tpu.memory_space<vmem>>, vector<1x32x32xbf16>
    %290 = vector.shape_cast %289 : vector<1x32x32xbf16> to vector<32x32xbf16>
    %cst_150 = arith.constant dense<0.000000e+00> : vector<8x32xf32>
    %291 = tpu.matmul %288, %290, %cst_150 {dimension_numbers = #tpu.dot_dimension_numbers<[1], [0], [0], [1], [0, 0, 1, 1], [], []>} : vector<8x32xbf16>, vector<32x32xbf16>, vector<8x32xf32> -> vector<8x32xf32>
    %c16 = arith.constant 16 : index
    %c0_151 = arith.constant 0 : index
    %c0_152 = arith.constant 0 : index
    %292 = vector.load %arg2[%c16, %c0_151, %c0_152] : memref<30x8x32xf32, #tpu.memory_space<vmem>>, vector<1x8x32xf32>
    %293 = vector.shape_cast %292 : vector<1x8x32xf32> to vector<8x32xf32>
    %294 = arith.addf %291, %293 : vector<8x32xf32>
    %295 = arith.truncf %275 : vector<8x32xf32> to vector<8x32xbf16>
    %c13_153 = arith.constant 13 : index
    %c0_154 = arith.constant 0 : index
    %c0_155 = arith.constant 0 : index
    %296 = vector.load %arg1[%c13_153, %c0_154, %c0_155] : memref<22x32x32xbf16, #tpu.memory_space<vmem>>, vector<1x32x32xbf16>
    %297 = vector.shape_cast %296 : vector<1x32x32xbf16> to vector<32x32xbf16>
    %cst_156 = arith.constant dense<0.000000e+00> : vector<8x32xf32>
    %298 = tpu.matmul %295, %297, %cst_156 {dimension_numbers = #tpu.dot_dimension_numbers<[1], [0], [0], [1], [0, 0, 1, 1], [], []>} : vector<8x32xbf16>, vector<32x32xbf16>, vector<8x32xf32> -> vector<8x32xf32>
    %c17 = arith.constant 17 : index
    %c0_157 = arith.constant 0 : index
    %c0_158 = arith.constant 0 : index
    %299 = vector.load %arg2[%c17, %c0_157, %c0_158] : memref<30x8x32xf32, #tpu.memory_space<vmem>>, vector<1x8x32xf32>
    %300 = vector.shape_cast %299 : vector<1x8x32xf32> to vector<8x32xf32>
    %301 = arith.addf %298, %300 : vector<8x32xf32>
    %302 = arith.truncf %287 : vector<16x32xf32> to vector<16x32xbf16>
    %303 = arith.truncf %294 : vector<8x32xf32> to vector<8x32xbf16>
    %cst_159 = arith.constant dense<0.000000e+00> : vector<16x8xf32>
    %304 = tpu.matmul %302, %303, %cst_159 {dimension_numbers = #tpu.dot_dimension_numbers<[1], [1], [0], [0], [0, 0, 1, 0], [], []>} : vector<16x32xbf16>, vector<8x32xbf16>, vector<16x8xf32> -> vector<16x8xf32>
    %c3_160 = arith.constant 3 : index
    %c0_161 = arith.constant 0 : index
    %c0_162 = arith.constant 0 : index
    %305 = vector.load %arg3[%c3_160, %c0_161, %c0_162] : memref<6x16x8xf32, #tpu.memory_space<vmem>>, vector<1x16x8xf32>
    %306 = vector.shape_cast %305 : vector<1x16x8xf32> to vector<16x8xf32>
    %307 = arith.addf %304, %306 : vector<16x8xf32>
    %cst_163 = arith.constant dense<0xFF800000> : vector<16xf32>
    %308 = vector.multi_reduction <maximumf>, %307, %cst_163 [1] : vector<16x8xf32> to vector<16xf32>
    %309 = vector.shape_cast %308 : vector<16xf32> to vector<16x1xf32>
    %cst_164 = arith.constant -1.000000e+30 : f32
    %310 = vector.broadcast %cst_164 : f32 to vector<16x1xf32>
    %311 = arith.maximumf %309, %310 : vector<16x1xf32>
    %312 = vector.broadcast %311 : vector<16x1xf32> to vector<16x8xf32>
    %313 = arith.subf %307, %312 : vector<16x8xf32>
    %314 = math.exp %313 : vector<16x8xf32>
    %cst_165 = arith.constant dense<0.000000e+00> : vector<16xf32>
    %315 = vector.multi_reduction <add>, %314, %cst_165 [1] : vector<16x8xf32> to vector<16xf32>
    %316 = vector.shape_cast %315 : vector<16xf32> to vector<16x1xf32>
    %cst_166 = arith.constant 1.000000e-30 : f32
    %317 = vector.broadcast %cst_166 : f32 to vector<16x1xf32>
    %318 = arith.maximumf %316, %317 : vector<16x1xf32>
    %319 = tpu.reciprocal %318 {approx = true} : vector<16x1xf32> -> vector<16x1xf32>
    %320 = vector.broadcast %319 : vector<16x1xf32> to vector<16x8xf32>
    %321 = arith.mulf %314, %320 : vector<16x8xf32>
    %322 = arith.truncf %321 : vector<16x8xf32> to vector<16x8xbf16>
    %323 = arith.truncf %301 : vector<8x32xf32> to vector<8x32xbf16>
    %cst_167 = arith.constant dense<0.000000e+00> : vector<16x32xf32>
    %324 = tpu.matmul %322, %323, %cst_167 {dimension_numbers = #tpu.dot_dimension_numbers<[1], [0], [0], [1], [0, 0, 1, 1], [], []>} : vector<16x8xbf16>, vector<8x32xbf16>, vector<16x32xf32> -> vector<16x32xf32>
    %325 = vector.extract_strided_slice %324 {offsets = [0, 0], sizes = [8, 32], strides = [1, 1]} : vector<16x32xf32> to vector<8x32xf32>
    %326 = vector.extract_strided_slice %324 {offsets = [8, 0], sizes = [8, 32], strides = [1, 1]} : vector<16x32xf32> to vector<8x32xf32>
    %327 = arith.select %2, %325, %326 : vector<8x32xi1>, vector<8x32xf32>
    %328 = arith.truncf %232 : vector<8x32xf32> to vector<8x32xbf16>
    %c14_168 = arith.constant 14 : index
    %c0_169 = arith.constant 0 : index
    %c0_170 = arith.constant 0 : index
    %329 = vector.load %arg1[%c14_168, %c0_169, %c0_170] : memref<22x32x32xbf16, #tpu.memory_space<vmem>>, vector<1x32x32xbf16>
    %330 = vector.shape_cast %329 : vector<1x32x32xbf16> to vector<32x32xbf16>
    %cst_171 = arith.constant dense<0.000000e+00> : vector<8x32xf32>
    %331 = tpu.matmul %328, %330, %cst_171 {dimension_numbers = #tpu.dot_dimension_numbers<[1], [0], [0], [1], [0, 0, 1, 1], [], []>} : vector<8x32xbf16>, vector<32x32xbf16>, vector<8x32xf32> -> vector<8x32xf32>
    %c18 = arith.constant 18 : index
    %c0_172 = arith.constant 0 : index
    %c0_173 = arith.constant 0 : index
    %332 = vector.load %arg2[%c18, %c0_172, %c0_173] : memref<30x8x32xf32, #tpu.memory_space<vmem>>, vector<1x8x32xf32>
    %333 = vector.shape_cast %332 : vector<1x8x32xf32> to vector<8x32xf32>
    %334 = arith.addf %331, %333 : vector<8x32xf32>
    %335 = arith.truncf %232 : vector<8x32xf32> to vector<8x32xbf16>
    %c15_174 = arith.constant 15 : index
    %c0_175 = arith.constant 0 : index
    %c0_176 = arith.constant 0 : index
    %336 = vector.load %arg1[%c15_174, %c0_175, %c0_176] : memref<22x32x32xbf16, #tpu.memory_space<vmem>>, vector<1x32x32xbf16>
    %337 = vector.shape_cast %336 : vector<1x32x32xbf16> to vector<32x32xbf16>
    %cst_177 = arith.constant dense<0.000000e+00> : vector<8x32xf32>
    %338 = tpu.matmul %335, %337, %cst_177 {dimension_numbers = #tpu.dot_dimension_numbers<[1], [0], [0], [1], [0, 0, 1, 1], [], []>} : vector<8x32xbf16>, vector<32x32xbf16>, vector<8x32xf32> -> vector<8x32xf32>
    %c19 = arith.constant 19 : index
    %c0_178 = arith.constant 0 : index
    %c0_179 = arith.constant 0 : index
    %339 = vector.load %arg2[%c19, %c0_178, %c0_179] : memref<30x8x32xf32, #tpu.memory_space<vmem>>, vector<1x8x32xf32>
    %340 = vector.shape_cast %339 : vector<1x8x32xf32> to vector<8x32xf32>
    %341 = arith.addf %338, %340 : vector<8x32xf32>
    %342 = arith.truncf %287 : vector<16x32xf32> to vector<16x32xbf16>
    %343 = arith.truncf %334 : vector<8x32xf32> to vector<8x32xbf16>
    %cst_180 = arith.constant dense<0.000000e+00> : vector<16x8xf32>
    %344 = tpu.matmul %342, %343, %cst_180 {dimension_numbers = #tpu.dot_dimension_numbers<[1], [1], [0], [0], [0, 0, 1, 0], [], []>} : vector<16x32xbf16>, vector<8x32xbf16>, vector<16x8xf32> -> vector<16x8xf32>
    %c4_181 = arith.constant 4 : index
    %c0_182 = arith.constant 0 : index
    %c0_183 = arith.constant 0 : index
    %345 = vector.load %arg3[%c4_181, %c0_182, %c0_183] : memref<6x16x8xf32, #tpu.memory_space<vmem>>, vector<1x16x8xf32>
    %346 = vector.shape_cast %345 : vector<1x16x8xf32> to vector<16x8xf32>
    %347 = arith.addf %344, %346 : vector<16x8xf32>
    %cst_184 = arith.constant dense<0xFF800000> : vector<16xf32>
    %348 = vector.multi_reduction <maximumf>, %347, %cst_184 [1] : vector<16x8xf32> to vector<16xf32>
    %349 = vector.shape_cast %348 : vector<16xf32> to vector<16x1xf32>
    %cst_185 = arith.constant -1.000000e+30 : f32
    %350 = vector.broadcast %cst_185 : f32 to vector<16x1xf32>
    %351 = arith.maximumf %349, %350 : vector<16x1xf32>
    %352 = vector.broadcast %351 : vector<16x1xf32> to vector<16x8xf32>
    %353 = arith.subf %347, %352 : vector<16x8xf32>
    %354 = math.exp %353 : vector<16x8xf32>
    %cst_186 = arith.constant dense<0.000000e+00> : vector<16xf32>
    %355 = vector.multi_reduction <add>, %354, %cst_186 [1] : vector<16x8xf32> to vector<16xf32>
    %356 = vector.shape_cast %355 : vector<16xf32> to vector<16x1xf32>
    %cst_187 = arith.constant 1.000000e-30 : f32
    %357 = vector.broadcast %cst_187 : f32 to vector<16x1xf32>
    %358 = arith.maximumf %356, %357 : vector<16x1xf32>
    %359 = tpu.reciprocal %358 {approx = true} : vector<16x1xf32> -> vector<16x1xf32>
    %360 = vector.broadcast %359 : vector<16x1xf32> to vector<16x8xf32>
    %361 = arith.mulf %354, %360 : vector<16x8xf32>
    %362 = arith.truncf %361 : vector<16x8xf32> to vector<16x8xbf16>
    %363 = arith.truncf %341 : vector<8x32xf32> to vector<8x32xbf16>
    %cst_188 = arith.constant dense<0.000000e+00> : vector<16x32xf32>
    %364 = tpu.matmul %362, %363, %cst_188 {dimension_numbers = #tpu.dot_dimension_numbers<[1], [0], [0], [1], [0, 0, 1, 1], [], []>} : vector<16x8xbf16>, vector<8x32xbf16>, vector<16x32xf32> -> vector<16x32xf32>
    %365 = vector.extract_strided_slice %364 {offsets = [0, 0], sizes = [8, 32], strides = [1, 1]} : vector<16x32xf32> to vector<8x32xf32>
    %366 = vector.extract_strided_slice %364 {offsets = [8, 0], sizes = [8, 32], strides = [1, 1]} : vector<16x32xf32> to vector<8x32xf32>
    %367 = arith.select %2, %365, %366 : vector<8x32xi1>, vector<8x32xf32>
    %368 = arith.addf %327, %367 : vector<8x32xf32>
    %cst_189 = arith.constant 5.000000e-01 : f32
    %369 = vector.broadcast %cst_189 : f32 to vector<8x32xf32>
    %370 = arith.mulf %368, %369 : vector<8x32xf32>
    %371 = arith.truncf %370 : vector<8x32xf32> to vector<8x32xbf16>
    %c21 = arith.constant 21 : index
    %c0_190 = arith.constant 0 : index
    %c0_191 = arith.constant 0 : index
    %372 = vector.load %arg1[%c21, %c0_190, %c0_191] : memref<22x32x32xbf16, #tpu.memory_space<vmem>>, vector<1x32x32xbf16>
    %373 = vector.shape_cast %372 : vector<1x32x32xbf16> to vector<32x32xbf16>
    %cst_192 = arith.constant dense<0.000000e+00> : vector<8x32xf32>
    %374 = tpu.matmul %371, %373, %cst_192 {dimension_numbers = #tpu.dot_dimension_numbers<[1], [0], [0], [1], [0, 0, 1, 1], [], []>} : vector<8x32xbf16>, vector<32x32xbf16>, vector<8x32xf32> -> vector<8x32xf32>
    %c27 = arith.constant 27 : index
    %c0_193 = arith.constant 0 : index
    %c0_194 = arith.constant 0 : index
    %375 = vector.load %arg2[%c27, %c0_193, %c0_194] : memref<30x8x32xf32, #tpu.memory_space<vmem>>, vector<1x8x32xf32>
    %376 = vector.shape_cast %375 : vector<1x8x32xf32> to vector<8x32xf32>
    %377 = arith.addf %374, %376 : vector<8x32xf32>
    %c3_195 = arith.constant 3 : index
    %378 = memref.load %arg6[%c3_195] : memref<4xf32, #tpu.memory_space<smem>>
    %379 = vector.broadcast %378 : f32 to vector<8x32xf32>
    %380 = arith.mulf %377, %379 : vector<8x32xf32>
    %cst_196 = arith.constant 1.000000e+00 : f32
    %381 = arith.subf %cst_196, %378 : f32
    %382 = vector.broadcast %381 : f32 to vector<8x32xf32>
    %383 = arith.mulf %275, %382 : vector<8x32xf32>
    %384 = arith.addf %380, %383 : vector<8x32xf32>
    %cst_197 = arith.constant dense<0.000000e+00> : vector<8xf32>
    %385 = vector.multi_reduction <add>, %384, %cst_197 [1] : vector<8x32xf32> to vector<8xf32>
    %386 = vector.shape_cast %385 : vector<8xf32> to vector<8x1xf32>
    %cst_198 = arith.constant 3.200000e+01 : f32
    %387 = vector.broadcast %cst_198 : f32 to vector<8x1xf32>
    %388 = arith.divf %386, %387 : vector<8x1xf32>
    %389 = vector.broadcast %388 : vector<8x1xf32> to vector<8x32xf32>
    %390 = arith.subf %384, %389 : vector<8x32xf32>
    %391 = vector.broadcast %388 : vector<8x1xf32> to vector<8x32xf32>
    %392 = arith.subf %384, %391 : vector<8x32xf32>
    %393 = arith.mulf %390, %392 : vector<8x32xf32>
    %cst_199 = arith.constant dense<0.000000e+00> : vector<8xf32>
    %394 = vector.multi_reduction <add>, %393, %cst_199 [1] : vector<8x32xf32> to vector<8xf32>
    %395 = vector.shape_cast %394 : vector<8xf32> to vector<8x1xf32>
    %cst_200 = arith.constant 3.200000e+01 : f32
    %396 = vector.broadcast %cst_200 : f32 to vector<8x1xf32>
    %397 = arith.divf %395, %396 : vector<8x1xf32>
    %398 = vector.broadcast %388 : vector<8x1xf32> to vector<8x32xf32>
    %399 = arith.subf %384, %398 : vector<8x32xf32>
    %cst_201 = arith.constant 9.99999974E-6 : f32
    %400 = vector.broadcast %cst_201 : f32 to vector<8x1xf32>
    %401 = arith.addf %397, %400 : vector<8x1xf32>
    %402 = math.rsqrt %401 : vector<8x1xf32>
    %403 = vector.broadcast %402 : vector<8x1xf32> to vector<8x32xf32>
    %404 = arith.mulf %399, %403 : vector<8x32xf32>
    %c28 = arith.constant 28 : index
    %c0_202 = arith.constant 0 : index
    %c0_203 = arith.constant 0 : index
    %405 = vector.load %arg2[%c28, %c0_202, %c0_203] : memref<30x8x32xf32, #tpu.memory_space<vmem>>, vector<1x8x32xf32>
    %406 = vector.shape_cast %405 : vector<1x8x32xf32> to vector<8x32xf32>
    %407 = arith.mulf %404, %406 : vector<8x32xf32>
    %c29 = arith.constant 29 : index
    %c0_204 = arith.constant 0 : index
    %c0_205 = arith.constant 0 : index
    %408 = vector.load %arg2[%c29, %c0_204, %c0_205] : memref<30x8x32xf32, #tpu.memory_space<vmem>>, vector<1x8x32xf32>
    %409 = vector.shape_cast %408 : vector<1x8x32xf32> to vector<8x32xf32>
    %410 = arith.addf %407, %409 : vector<8x32xf32>
    %411 = arith.truncf %410 : vector<8x32xf32> to vector<8x32xbf16>
    %c0_206 = arith.constant 0 : index
    %c0_207 = arith.constant 0 : index
    %412 = vector.load %arg4[%c0_206, %c0_207] : memref<32x128xbf16, #tpu.memory_space<vmem>>, vector<32x128xbf16>
    %cst_208 = arith.constant dense<0.000000e+00> : vector<8x128xf32>
    %413 = tpu.matmul %411, %412, %cst_208 {dimension_numbers = #tpu.dot_dimension_numbers<[1], [0], [0], [1], [0, 0, 1, 1], [], []>} : vector<8x32xbf16>, vector<32x128xbf16>, vector<8x128xf32> -> vector<8x128xf32>
    %c0_209 = arith.constant 0 : index
    %c0_210 = arith.constant 0 : index
    %414 = vector.load %arg5[%c0_209, %c0_210] : memref<8x128xf32, #tpu.memory_space<vmem>>, vector<8x128xf32>
    %415 = arith.addf %413, %414 : vector<8x128xf32>
    %416 = arith.negf %415 : vector<8x128xf32>
    %417 = math.exp %416 : vector<8x128xf32>
    %cst_211 = arith.constant 1.000000e+00 : f32
    %418 = vector.broadcast %cst_211 : f32 to vector<8x128xf32>
    %419 = arith.addf %418, %417 : vector<8x128xf32>
    %420 = arith.divf %418, %419 : vector<8x128xf32>
    %c0_212 = arith.constant 0 : index
    %c0_213 = arith.constant 0 : index
    %421 = vector.load %arg7[%c0_212, %c0_213] : memref<8x128xf32, #tpu.memory_space<vmem>>, vector<8x128xf32>
    tpu.vector_store %arg7[%c0_212, %c0_213], %420 {strides = array<i32>} : memref<8x128xf32, #tpu.memory_space<vmem>>, vector<8x128xf32>,
    return
  }
}

</mosaic_0001>

<bundles_post_ra>
// kernel: tpu_custom_call.1
= control target key start
LH: loop header
LB: loop body
LE: loop exit
PB: predicated region body
PF: predicated region fallthrough
CT: control target
= control target key end

     0   :  { %12 = vsyncpa [#allocation3], 0  ;;  %s2887_s0 = inlined_call_operand.vmem [shape: f32[2,8,32], index: 0, kind: input, shape index: {}]   ;;  %s2888_s1 = inlined_call_operand.hbm [shape: bf16[22,32,32], index: 1, kind: input, shape index: {}]   ;;  %s2889_s2 = inlined_call_operand.hbm [shape: f32[30,8,32], index: 2, kind: input, shape index: {}]   ;;  %s2890_s3 = inlined_call_operand.vmem [shape: f32[6,16,8], index: 3, kind: input, shape index: {}]   ;;  %s2891_s4 = inlined_call_operand.vmem [shape: bf16[32,128], index: 4, kind: input, shape index: {}]   ;;  %s2892_s5 = inlined_call_operand.vmem [shape: f32[8,128], index: 5, kind: input, shape index: {}]   ;;  %s2893_s6 = inlined_call_operand.vmem [shape: f32[4], index: 6, kind: input, shape index: {}]   ;;  %s2894_s7 = inlined_call_operand.hbm [shape: f32[8,128], index: 7, kind: output, shape index: {}]  }
   0x1   :  { %13 = vsyncpa [#allocation7], 0 }
   0x2   :  { %14 = vsyncpa [#allocation5], 0 }
   0x3   :  { %15 = vsyncpa [#allocation4], 0  ;;  %s2547_s24 = smov [#allocation2]  }
   0x4   :  { %s23_s25 = sshll.u32 %s2547_s24, 4  ;;  %s24_s25 = int_to_ptr.vmem [resolvable:$true] %s23_s25 }
   0x5   :  { %s2475_s26 = scalar_lea.vmem %s24_s25, 5632  ;;  %p2480_p1 = scmp.lt.s32.totalorder %s24_s25, %s24_s25 }
   0x6   :  { %p2476_p0 = scmp.ne.s32.totalorder %s24_s25, %s2475_s26  ;;  %p2481_p2 = scmp.lt.s32.totalorder %s2475_s26, %s2475_s26 }
   0x8   :  { %p2482_p3 = por %p2481_p2, %p2480_p1 }
   0xa   :  { %p2483_p4 = pnand %p2482_p3, %p2476_p0 }
   0xc   :  { %2486 = shalt.err (!%p2483_p4)
}
   0xd   :  { %s2548_s27 = smov 64   ;;  %s2549_s28 = smov 4  }
   0xe   :  { %29 = dma.hbm_to_vmem [thread:$0]  %s2888_s1, 5632, %s24_s25, [#allocation3], %s2548_s27, %s2548_s27, %s2549_s28  }
   0xf   :  { %s2550_s8 = smov [#allocation6]  }
  0x10   :  { %s35_s9 = sshll.u32 %s2550_s8, 4  ;;  %s36_s9 = int_to_ptr.vmem [resolvable:$true] %s35_s9 }
  0x11   :  { %s2495_s10 = scalar_lea.vmem %s36_s9, 3840  ;;  %p2500_p6 = scmp.lt.s32.totalorder %s36_s9, %s36_s9 }
  0x12   :  { %p2496_p5 = scmp.ne.s32.totalorder %s36_s9, %s2495_s10  ;;  %p2501_p7 = scmp.lt.s32.totalorder %s2495_s10, %s2495_s10 }
  0x14   :  { %p2502_p8 = por %p2501_p7, %p2500_p6 }
  0x16   :  { %p2503_p9 = pnand %p2502_p8, %p2496_p5 }
  0x18   :  { %2506 = shalt.err (!%p2503_p9)
}
  0x19   :  { %s2551_s11 = smov 128   ;;  %s2552_s12 = smov 8  }
  0x1a   :  { %41 = dma.hbm_to_vmem [thread:$0]  %s2889_s2, 3840, %s36_s9, [#allocation7], %s2551_s11, %s2551_s11, %s2552_s12  }
  0x1b   :  { %s54_s1 = sshll.u32 %s2893_s6, 4  ;;  %s55_s1 = int_to_ptr.vmem [resolvable:$true] %s54_s1 }
  0x1c   :  { %s2507_s17 = scalar_lea.vmem %s55_s1, 16  ;;  %p2512_p11 = scmp.lt.s32.totalorder %s55_s1, %s55_s1 }
  0x1d   :  { %p2508_p10 = scmp.ne.s32.totalorder %s55_s1, %s2507_s17  ;;  %p2513_p12 = scmp.lt.s32.totalorder %s2507_s17, %s2507_s17 }
  0x1f   :  { %p2514_p13 = por %p2513_p12, %p2512_p11 }
  0x21   :  { %p2515_p0 = pnand %p2514_p13, %p2508_p10 }
  0x23   :  { %2518 = shalt.err (!%p2515_p0)
}
  0x24   :  { %s2553_s18 = smov [#allocation8]  }
  0x25   :  { %57 = dma.vmem_to_smem %s55_s1, 16, %s2553_s18, [#allocation5]  }
  0x26   :  { %2539 = dma.done.wait [#allocation3], 5632  }
  0x27   :  { %2540 = vsyncadd [#allocation3], 4294961664 }
  0x28   :  { %2541 = dma.done.wait [#allocation7], 3840  }
  0x29   :  { %2542 = vsyncadd [#allocation7], 4294963456 }
  0x2a   :  { %2543 = dma.done.wait [#allocation5], 16  }
  0x2b   :  { %2544 = vsyncadd [#allocation5], 4294967280 }
  0x2c   :  { %67 = sfence }
  0x2d   :  { %v2375_v0 = vld [vmem:[#allocation2 + $0x8] sm:$0xff]   ;;  %v2554_v1 = vmov 0.0   ;;  %v2376_v2 = vld [vmem:[#allocation2 + $0x18] sm:$0xff]   ;;  %v2377_v3 = vld [vmem:[#allocation2] sm:$0xff]   ;;  %vm2555_vm0 = vmmov 0   ;;  %vm91_vm1 = vcmask 261120   ;;  %v69_v54 = vlaneseq }
  0x2e   :  { %2153 = vmatprep.subr.bf16.mxu0 %v2554_v1  ;;  %2161 = vmatprep.subr.bf16.mxu1 %v2554_v1  ;;  %v2378_v4 = vld [vmem:[#allocation2 + $0x10] sm:$0xff]   ;;  %v72_v5 = vld [vmem:[%s2887_s0] sm:$0xff]  ;;  %v2000_v6 = vld [vmem:[%s2887_s0 + $0x8] sm:$0xff]  ;;  %vm549_vm2 = vcmask 1043456   ;;  %vm517_vm4 = vcmask 64512   ;;  %s2044_s9 = sld [smem:[#allocation8 + $0x1]] }
  0x2f   :  { %2154 = vmatpush3.bf16.msra.mxu0 %v2375_v0  ;;  %2157 = vmatprep.mubr.msk.bf16.mxu0 %vm2555_vm0, %v2554_v1  ;;  %v73_v7 = vpack.c.bf16 %v72_v5, %v72_v5  ;;  %v146_v8 = vpack.c.bf16 %v2000_v6, %v2000_v6  ;;  %v2379_v9 = vld [vmem:[#allocation2 + $0x88] sm:$0xff]   ;;  %v2381_v11 = vld [vmem:[#allocation2 + $0x80] sm:$0xff]   ;;  %v2384_v45 = vld [vmem:[#allocation2 + $0x38] sm:$0xff]   ;;  %v2666_v61 = vand.u32 127, %v69_v54  ;;  %s1146_s11 = sld [smem:[#allocation8]] }
  0x30   :  { %2162 = vmatpush3.bf16.msra.mxu1 %v2376_v2  ;;  %2155 = vmatprep.subr.bf16.mxu0 %v2554_v1  ;;  %v2380_v10 = vld [vmem:[#allocation2 + $0xa8] sm:$0xff]   ;;  %v2382_v12 = vld [vmem:[#allocation2 + $0xa0] sm:$0xff]   ;;  %v2386_v48 = vld [vmem:[#allocation2 + $0x30] sm:$0xff]  }
  0x31   :  { %2163 = vmatprep.subr.bf16.mxu1 %v2554_v1  ;;  %2165 = vmatprep.mubr.msk.bf16.mxu1 %vm2555_vm0, %v2554_v1  ;;  %v78_v13 = vld [vmem:[#allocation6] sm:$0xff]  ;;  %v153_v14 = vld [vmem:[#allocation6 + $0x8] sm:$0xff]  ;;  %v354_v57 = vld [vmem:[#allocation6 + $0x10] sm:$0xff]  ;;  %vm71_vm3 = vcmp.lt.s32.totalorder %v2666_v61, 16 }
  0x32   :  { %v2383_v43 = vld [vmem:[#allocation2 + $0x28] sm:$0xff]   ;;  %v2385_v47 = vld [vmem:[#allocation2 + $0x20] sm:$0xff]   ;;  %v413_v59 = vld [vmem:[#allocation6 + $0x18] sm:$0xff] }
  0x33   :  { %2156 = vmatpush3.bf16.msra.mxu0 %v2377_v3  ;;  %v290_v62 = vld [vmem:[#allocation6 + $0x60] sm:$0xff] }
  0x34   :  { %2164 = vmatpush3.bf16.msra.mxu1 %v2378_v4  ;;  %2169 = vmatprep.subr.bf16.mxu0 %v2554_v1  ;;  %s1241_s10 = ssub.f32 1.0, %s2044_s9 }
  0x35   :  { %2177 = vmatprep.subr.bf16.mxu1 %v2554_v1  ;;  %s1149_s12 = ssub.f32 1.0, %s1146_s11 }
  0x36   :  { %2158 = vmatmul.mubr.msk.bf16.vlgmr.msra.gmra.mxu0 %vm91_vm1, %v73_v7 }
  0x37   :  { %2166 = vmatmul.mubr.msk.bf16.vlgmr.msra.gmra.mxu1 %vm91_vm1, %v146_v8  ;;  %2173 = vmatprep.mubr.msk.bf16.mxu0 %vm2555_vm0, %v2554_v1 }
  0x38   :  { %2181 = vmatprep.mubr.msk.bf16.mxu1 %vm2555_vm0, %v2554_v1  ;;  %2170 = vmatpush3.bf16.msra.mxu0 %v2379_v9 }
  0x39   :  { %2178 = vmatpush3.bf16.msra.mxu1 %v2380_v10  ;;  %2171 = vmatprep.subr.bf16.mxu0 %v2554_v1 }
  0x3a   :  { %2179 = vmatprep.subr.bf16.mxu1 %v2554_v1 }
  0x3c   :  { %2172 = vmatpush3.bf16.msra.mxu0 %v2381_v11 }
  0x3d   :  { %2180 = vmatpush3.bf16.msra.mxu1 %v2382_v12  ;;  %2185 = vmatprep.subr.bf16.mxu0 %v2554_v1 }
  0x3e   :  { %2193 = vmatprep.subr.bf16.mxu1 %v2554_v1 }
  0xf6   :  { %v129_v15 = vpop.f32.mrf.mxu0 }
  0xf7   :  { %v130_v16 = vadd.f32 %v129_v15, %v78_v13  ;;  %v203_v17 = vpop.f32.mrf.mxu1 }
  0xf8   :  { %v204_v18 = vadd.f32 %v203_v17, %v153_v14  ;;  %v2159_v19 = vpop.f32.mrf.mxu0 }
  0xf9   :  { %v135_v20 = vmul.f32 %v130_v16, %v130_v16  ;;  %v2167_v21 = vpop.f32.mrf.mxu1  ;;  %v468_v19 = vld [vmem:[%s2890_s3] sm:$0xff] }
  0xfa   :  { %v209_v22 = vmul.f32 %v204_v18, %v204_v18  ;;  %v132_v23 = vpop.f32.mrf.mxu0 }
  0xfb   :  { %v136_v24 = vmul.f32 %v135_v20, %v130_v16  ;;  %v206_v25 = vpop.f32.mrf.mxu1  ;;  %v469_v23 = vld [vmem:[%s2890_s3 + $0x8] sm:$0xff] }
  0xfc   :  { %v210_v26 = vmul.f32 %v209_v22, %v204_v18  ;;  %v2160_v27 = vpop.f32.mrf.mxu0 }
  0xfd   :  { %v137_v28 = vmul.f32 0.044715, %v136_v24  ;;  %v2168_v29 = vpop.f32.mrf.mxu1 }
  0xfe   :  { %v211_v30 = vmul.f32 0.044715, %v210_v26 }
  0xff   :  { %v138_v31 = vadd.f32 %v137_v28, %v130_v16  ;;  %v601_v28 = vld [vmem:[#allocation6 + $0x20] sm:$0xff] }
 0x100   :  { %v212_v32 = vadd.f32 %v211_v30, %v204_v18 }
 0x101   :  { %v139_v33 = vmul.f32 0.7978846, %v138_v31 }
 0x102   :  { %v213_v34 = vmul.f32 0.7978846, %v212_v32 }
 0x103   :  { %2413 = vtanh.f32 %v139_v33 }
 0x104   :  { %2415 = vtanh.f32 %v213_v34 }
 0x110   :  { %v2414_v35 = vpop.eup %2413 }
 0x111   :  { %v2416_v36 = vpop.eup %2415  ;;  %v141_v37 = vadd.f32 1.0, %v2414_v35 }
 0x112   :  { %v215_v38 = vadd.f32 1.0, %v2416_v36 }
 0x113   :  { %v142_v39 = vmul.f32 0.5, %v141_v37  ;;  %v2389_v37 = vld [vmem:[#allocation2 + $0x68] sm:$0xff]  }
 0x114   :  { %v216_v40 = vmul.f32 0.5, %v215_v38  ;;  %v2390_v38 = vld [vmem:[#allocation2 + $0x60] sm:$0xff]  }
 0x115   :  { %v2632_v41 = vmul.f32 %v142_v39, %v130_v16  ;;  %v2387_v16 = vld [vmem:[#allocation2 + $0x48] sm:$0xff]  }
 0x116   :  { %v2634_v42 = vmul.f32 %v216_v40, %v204_v18  ;;  %v2388_v18 = vld [vmem:[#allocation2 + $0x40] sm:$0xff]  }
 0x117   :  { %v2638_v44 = vpack.c.bf16 %v2632_v41, %v2632_v41 }
 0x118   :  { %v2642_v46 = vpack.c.bf16 %v2634_v42, %v2634_v42 }
 0x119   :  { %2174 = vmatmul.mubr.msk.bf16.vlgmr.msra.gmra.mxu0 %vm91_vm1, %v2638_v44 }
 0x11a   :  { %2182 = vmatmul.mubr.msk.bf16.vlgmr.msra.gmra.mxu1 %vm91_vm1, %v2642_v46  ;;  %2186 = vmatpush3.bf16.msra.mxu0 %v2383_v43 }
 0x11b   :  { %2194 = vmatpush3.bf16.msra.mxu1 %v2384_v45  ;;  %2187 = vmatprep.subr.bf16.mxu0 %v2554_v1 }
 0x11c   :  { %2195 = vmatprep.subr.bf16.mxu1 %v2554_v1  ;;  %2189 = vmatprep.mubr.msk.bf16.mxu0 %vm2555_vm0, %v2554_v1 }
 0x11d   :  { %2197 = vmatprep.mubr.msk.bf16.mxu1 %vm2555_vm0, %v2554_v1 }
 0x11e   :  { %2188 = vmatpush3.bf16.msra.mxu0 %v2385_v47 }
 0x11f   :  { %2196 = vmatpush3.bf16.msra.mxu1 %v2386_v48  ;;  %2201 = vmatprep.subr.bf16.mxu0 %v2554_v1 }
 0x120   :  { %2207 = vmatprep.subr.bf16.mxu1 %v2554_v1 }
 0x121   :  { %2190 = vmatmul.mubr.msk.bf16.vlgmr.msra.gmra.mxu0 %vm91_vm1, %v2642_v46 }
 0x122   :  { %2198 = vmatmul.mubr.msk.bf16.vlgmr.msra.gmra.mxu1 %vm91_vm1, %v2642_v46  ;;  %2203 = vmatprep.mubr.msk.bf16.mxu0 %vm2555_vm0, %v2554_v1 }
 0x123   :  { %2209 = vmatprep.mubr.msk.bf16.mxu1 %vm2555_vm0, %v2554_v1 }
 0x1d9   :  { %v2664_v49 = vpop.f32.mrf.mxu0 }
 0x1da   :  { %v340_v50 = vpop.f32.mrf.mxu1 }
 0x1db   :  { %v2175_v51 = vpop.f32.mrf.mxu0  ;;  %v341_v6 = vadd.f32 %v340_v50, %v290_v62 }
 0x1dc   :  { %v2183_v52 = vpop.f32.mrf.mxu1 }
 0x1dd   :  { %v278_v53 = vpop.f32.mrf.mxu0  ;;  %v346_v14 = vsel %vm71_vm3, %v341_v6, 0.0  ;;  %v347_v15 = vsel %vm71_vm3, 0.0, %v341_v6  ;;  %v225_v6 = vld [vmem:[#allocation6 + $0x40] sm:$0xff] }
 0x1de   :  { %v343_v55 = vpop.f32.mrf.mxu1  ;;  %v466_v17 = vpack.c.bf16 %v347_v15, %v346_v14 }
 0x1df   :  { %v2176_v56 = vpop.f32.mrf.mxu0 }
 0x1e0   :  { %v2184_v58 = vpop.f32.mrf.mxu1  ;;  %v2024_v56 = vld [vmem:[%s2890_s3 + $0x10] sm:$0xff] }
 0x1e1   :  { %v401_v60 = vpop.f32.mrf.mxu0 }
 0x1e2   :  { %v402_v63 = vadd.f32 %v401_v60, %v354_v57  ;;  %v460_v0 = vpop.f32.mrf.mxu1  ;;  %v2025_v60 = vld [vmem:[%s2890_s3 + $0x18] sm:$0xff] }
 0x1e3   :  { %v461_v2 = vadd.f32 %v460_v0, %v413_v59  ;;  %v2191_v3 = vpop.f32.mrf.mxu0 }
 0x1e4   :  { %v467_v4 = vpack.c.bf16 %v402_v63, %v402_v63  ;;  %v2199_v5 = vpop.f32.mrf.mxu1  ;;  %v843_v3 = vld [vmem:[#allocation6 + $0x30] sm:$0xff] }
 0x1e5   :  { %v545_v7 = vpack.c.bf16 %v461_v2, %v461_v2  ;;  %v404_v8 = vpop.f32.mrf.mxu0 }
 0x1e6   :  { %v474_v9 = vsel %vm91_vm1, %v467_v4, 0  ;;  %v463_v10 = vpop.f32.mrf.mxu1 }
 0x1e7   :  { %v551_v11 = vsel %vm549_vm2, %v545_v7, 0  ;;  %v2192_v12 = vpop.f32.mrf.mxu0  ;;  %2202 = vmatpush3.bf16.xpose.msra.mxu0 %v474_v9  ;;  %v276_v10 = vadd.f32 %v2664_v49, %v225_v6 }
 0x1e8   :  { %v2200_v13 = vpop.f32.mrf.mxu1  ;;  %2208 = vmatpush3.bf16.msra.mxu1 %v551_v11  ;;  %2213 = vmatprep.subr.bf16.mxu0 %v2554_v1 }
 0x1e9   :  { %2221 = vmatprep.subr.bf16.mxu1 %v2554_v1  ;;  %v281_v14 = vsel %vm71_vm3, %v276_v10, 0.0  ;;  %v282_v15 = vsel %vm71_vm3, 0.0, %v276_v10 }
 0x1ee   :  { %2204 = vmatmul.mubr.msk.bf16.vlgmr.msra.gmra.mxu0 %vm91_vm1, %v466_v17 }
 0x1ef   :  { %2214 = vmatpush3.bf16.msra.mxu0 %v2387_v16  ;;  %2217 = vmatprep.mubr.msk.bf16.mxu0 %vm2555_vm0, %v2554_v1  ;;  %v955_v16 = vpack.c.bf16 %v282_v15, %v281_v14  ;;  %v2394_v14 = vld [vmem:[#allocation2 + $0x70] sm:$0xff]  }
 0x1f0   :  { %2215 = vmatprep.subr.bf16.mxu0 %v2554_v1 }
 0x1f3   :  { %2216 = vmatpush3.bf16.msra.mxu0 %v2388_v18 }
 0x1f4   :  { %2229 = vmatprep.subr.bf16.mxu0 %v2554_v1 }
 0x1f6   :  { %2218 = vmatmul.mubr.msk.bf16.vlgmr.msra.gmra.mxu0 %vm91_vm1, %v2638_v44 }
 0x1f7   :  { %2231 = vmatprep.mubr.msk.bf16.mxu0 %vm2555_vm0, %v2554_v1 }
 0x2ae   :  { %v510_v20 = vpop.f32.mrf.mxu0 }
 0x2af   :  { %v511_v21 = vadd.f32 %v510_v20, %v468_v19 }
 0x2b0   :  { %v2205_v22 = vpop.f32.mrf.mxu0 }
 0x2b1   :  { %v518_v24 = vsel %vm517_vm4, %v511_v21, -inf }
 0x2b2   :  { %519 = vmax.xlane.f32.xlu0 %v518_v24  ;;  %v513_v25 = vpop.f32.mrf.mxu0  ;;  %v2391_v24 = vld [vmem:[#allocation2 + $0x58] sm:$0xff]  }
 0x2b3   :  { %v514_v26 = vadd.f32 %v513_v25, %v469_v23 }
 0x2b4   :  { %v2206_v27 = vpop.f32.mrf.mxu0 }
 0x2b5   :  { %v521_v29 = vsel %vm517_vm4, %v514_v26, -inf }
 0x2b6   :  { %522 = vmax.xlane.f32.xlu0 %v521_v29  ;;  %v648_v30 = vpop.f32.mrf.mxu0 }
 0x2b7   :  { %v649_v31 = vadd.f32 %v648_v30, %v601_v28 }
 0x2b8   :  { %v2219_v32 = vpop.f32.mrf.mxu0 }
 0x2b9   :  { %v713_v33 = vpack.c.bf16 %v649_v31, %v649_v31 }
 0x2ba   :  { %v651_v34 = vpop.f32.mrf.mxu0 }
 0x2bb   :  { %v718_v35 = vsel %vm91_vm1, %v713_v33, 0 }
 0x2bc   :  { %v2220_v36 = vpop.f32.mrf.mxu0  ;;  %2230 = vmatpush3.bf16.xpose.msra.mxu0 %v718_v35 }
 0x2bd   :  { %2241 = vmatprep.subr.bf16.mxu0 %v2554_v1 }
 0x2c3   :  { %2232 = vmatmul.mubr.msk.bf16.vlgmr.msra.gmra.mxu0 %vm91_vm1, %v466_v17 }
 0x2c4   :  { %2242 = vmatpush3.bf16.msra.mxu0 %v2389_v37  ;;  %2245 = vmatprep.mubr.msk.bf16.mxu0 %vm2555_vm0, %v2554_v1 }
 0x2c5   :  { %2243 = vmatprep.subr.bf16.mxu0 %v2554_v1 }
 0x2c8   :  { %2244 = vmatpush3.bf16.msra.mxu0 %v2390_v38  ;;  %v2034_v38 = vld [vmem:[%s2890_s3 + $0x20] sm:$0xff] }
 0x2c9   :  { %2257 = vmatprep.subr.bf16.mxu0 %v2554_v1 }
 0x2cb   :  { %2246 = vmatmul.mubr.msk.bf16.vlgmr.msra.gmra.mxu0 %vm91_vm1, %v2642_v46 }
 0x2cc   :  { %2259 = vmatprep.mubr.msk.bf16.mxu0 %vm2555_vm0, %v2554_v1 }
 0x33b   :  { %v520_v39 = vpop.xlane.xlu0 %519 }
 0x33c   :  { %v524_v40 = vmax.f32 %v520_v39, -1e+30 }
 0x33e   :  { %v526_v43 = vsub.f32 %v511_v21, %v524_v40 }
 0x33f   :  { %v523_v45 = vpop.xlane.xlu0 %522 }
 0x340   :  { %v528_v47 = vmul.f32 1.442695, %v526_v43  ;;  %v525_v48 = vmax.f32 %v523_v45, -1e+30  ;;  %v2035_v45 = vld [vmem:[%s2890_s3 + $0x28] sm:$0xff] }
 0x342   :  { %2417 = vpow2.f32 %v528_v47  ;;  %v527_v50 = vsub.f32 %v514_v26, %v525_v48  ;;  %v2392_v26 = vld [vmem:[#allocation2 + $0x50] sm:$0xff]  }
 0x344   :  { %v530_v51 = vmul.f32 1.442695, %v527_v50 }
 0x346   :  { %2419 = vpow2.f32 %v530_v51 }
 0x34f   :  { %v2418_v52 = vpop.eup %2417 }
 0x350   :  { %v532_v53 = vsel %vm517_vm4, %v2418_v52, 0.0 }
 0x351   :  { %533 = vadd.xlane.f32.xlu1 %v532_v53 }
 0x353   :  { %v2420_v54 = vpop.eup %2419 }
 0x354   :  { %v535_v55 = vsel %vm517_vm4, %v2420_v54, 0.0 }
 0x355   :  { %536 = vadd.xlane.f32.xlu1 %v535_v55 }
 0x383   :  { %v754_v57 = vpop.f32.mrf.mxu0 }
 0x384   :  { %v755_v58 = vadd.f32 %v2024_v56, %v754_v57 }
 0x385   :  { %v2233_v59 = vpop.f32.mrf.mxu0 }
 0x386   :  { %v761_v62 = vsel %vm517_vm4, %v755_v58, -inf }
 0x387   :  { %762 = vmax.xlane.f32.xlu0 %v761_v62  ;;  %v757_v63 = vpop.f32.mrf.mxu0 }
 0x388   :  { %v758_v0 = vadd.f32 %v2025_v60, %v757_v63  ;;  %v660_v63 = vld [vmem:[#allocation6 + $0x28] sm:$0xff] }
 0x389   :  { %v2234_v2 = vpop.f32.mrf.mxu0 }
 0x38a   :  { %v764_v4 = vsel %vm517_vm4, %v758_v0, -inf }
 0x38b   :  { %765 = vmax.xlane.f32.xlu1 %v764_v4  ;;  %v890_v5 = vpop.f32.mrf.mxu0 }
 0x38c   :  { %v891_v7 = vadd.f32 %v890_v5, %v843_v3 }
 0x38d   :  { %v2247_v8 = vpop.f32.mrf.mxu0 }
 0x38e   :  { %v956_v9 = vpack.c.bf16 %v891_v7, %v891_v7 }
 0x38f   :  { %v893_v11 = vpop.f32.mrf.mxu0 }
 0x390   :  { %v964_v12 = vsel %vm91_vm1, %v956_v9, 0 }
 0x391   :  { %v2248_v13 = vpop.f32.mrf.mxu0  ;;  %2258 = vmatpush3.bf16.xpose.msra.mxu0 %v964_v12  ;;  %v2393_v12 = vld [vmem:[#allocation2 + $0x78] sm:$0xff]  }
 0x392   :  { %2269 = vmatprep.subr.bf16.mxu0 %v2554_v1 }
 0x398   :  { %2260 = vmatmul.mubr.msk.bf16.vlgmr.msra.gmra.mxu0 %vm91_vm1, %v955_v16 }
 0x399   :  { %2273 = vmatprep.mubr.msk.bf16.mxu0 %vm2555_vm0, %v2554_v1 }
 0x3da   :  { %v534_v49 = vpop.xlane.xlu1 %533 }
 0x3db   :  { %v538_v17 = vmax.f32 %v534_v49, 1e-30 }
 0x3dd   :  { %2421 = vrcp.f32 %v538_v17 }
 0x3de   :  { %v537_v18 = vpop.xlane.xlu1 %536 }
 0x3df   :  { %v539_v19 = vmax.f32 %v537_v18, 1e-30 }
 0x3e1   :  { %2423 = vrcp.f32 %v539_v19 }
 0x3ea   :  { %v2422_v20 = vpop.eup %2421 }
 0x3eb   :  { %v542_v22 = vmul.f32 %v2422_v20, %v2418_v52 }
 0x3ee   :  { %v2424_v21 = vpop.eup %2423 }
 0x3ef   :  { %v543_v23 = vmul.f32 %v2424_v21, %v2420_v54 }
 0x3f1   :  { %v544_v25 = vpack.c.bf16 %v543_v23, %v542_v22 }
 0x3f3   :  { %2210 = vmatmul.mubr.msk.bf16.vlgmr.msra.gmra.mxu1 %vm517_vm4, %v544_v25 }
 0x3f4   :  { %2222 = vmatpush3.bf16.msra.mxu1 %v2391_v24  ;;  %2225 = vmatprep.mubr.msk.bf16.mxu1 %vm2555_vm0, %v2554_v1 }
 0x3f5   :  { %2223 = vmatprep.subr.bf16.mxu1 %v2554_v1 }
 0x3f8   :  { %2224 = vmatpush3.bf16.msra.mxu1 %v2392_v26 }
 0x3f9   :  { %2235 = vmatprep.subr.bf16.mxu1 %v2554_v1 }
 0x3fb   :  { %2226 = vmatmul.mubr.msk.bf16.vlgmr.msra.gmra.mxu1 %vm91_vm1, %v2638_v44 }
 0x3fc   :  { %2237 = vmatprep.mubr.msk.bf16.mxu1 %vm2555_vm0, %v2554_v1 }
 0x410   :  { %v763_v27 = vpop.xlane.xlu0 %762 }
 0x411   :  { %v767_v28 = vmax.f32 %v763_v27, -1e+30 }
 0x413   :  { %v769_v29 = vsub.f32 %v755_v58, %v767_v28 }
 0x414   :  { %v766_v30 = vpop.xlane.xlu1 %765 }
 0x415   :  { %v771_v31 = vmul.f32 1.442695, %v769_v29  ;;  %v768_v32 = vmax.f32 %v766_v30, -1e+30 }
 0x417   :  { %2425 = vpow2.f32 %v771_v31  ;;  %v770_v33 = vsub.f32 %v758_v0, %v768_v32 }
 0x419   :  { %v773_v34 = vmul.f32 1.442695, %v770_v33  ;;  %v902_v33 = vld [vmem:[#allocation6 + $0x38] sm:$0xff] }
 0x41b   :  { %2427 = vpow2.f32 %v773_v34 }
 0x424   :  { %v2426_v35 = vpop.eup %2425 }
 0x425   :  { %v775_v36 = vsel %vm517_vm4, %v2426_v35, 0.0 }
 0x426   :  { %776 = vadd.xlane.f32.xlu0 %v775_v36 }
 0x428   :  { %v2428_v37 = vpop.eup %2427 }
 0x429   :  { %v778_v44 = vsel %vm517_vm4, %v2428_v37, 0.0 }
 0x42a   :  { %779 = vadd.xlane.f32.xlu1 %v778_v44 }
 0x458   :  { %v1000_v39 = vpop.f32.mrf.mxu0 }
 0x459   :  { %v1001_v40 = vadd.f32 %v2034_v38, %v1000_v39 }
 0x45a   :  { %v2261_v43 = vpop.f32.mrf.mxu0 }
 0x45b   :  { %v1007_v47 = vsel %vm517_vm4, %v1001_v40, -inf }
 0x45c   :  { %1008 = vmax.xlane.f32.xlu0 %v1007_v47  ;;  %v1003_v48 = vpop.f32.mrf.mxu0 }
 0x45d   :  { %v1004_v50 = vadd.f32 %v2035_v45, %v1003_v48 }
 0x45e   :  { %v2262_v51 = vpop.f32.mrf.mxu0 }
 0x45f   :  { %v1010_v52 = vsel %vm517_vm4, %v1004_v50, -inf }
 0x460   :  { %1011 = vmax.xlane.f32.xlu1 %v1010_v52 }
 0x4af   :  { %v777_v53 = vpop.xlane.xlu0 %776 }
 0x4b0   :  { %v781_v54 = vmax.f32 %v777_v53, 1e-30  ;;  %v2396_v53 = vld [vmem:[#allocation2 + $0xb0] sm:$0xff]  }
 0x4b2   :  { %2429 = vrcp.f32 %v781_v54 }
 0x4b3   :  { %v587_v55 = vpop.f32.mrf.mxu1  ;;  %v780_v56 = vpop.xlane.xlu1 %779 }
 0x4b4   :  { %v782_v57 = vmax.f32 %v780_v56, 1e-30  ;;  %v2397_v56 = vld [vmem:[#allocation2 + $0x98] sm:$0xff]  }
 0x4b5   :  { %v2211_v58 = vpop.f32.mrf.mxu1  ;;  %2270 = vmatpush3.bf16.msra.mxu0 %v2397_v56 }
 0x4b6   :  { %2431 = vrcp.f32 %v782_v57  ;;  %2271 = vmatprep.subr.bf16.mxu0 %v2554_v1  ;;  %v2398_v57 = vld [vmem:[#allocation2 + $0x90] sm:$0xff]  }
 0x4b7   :  { %v590_v59 = vpop.f32.mrf.mxu1 }
 0x4b8   :  { %v2746_v60 = vsel %vm71_vm3, %v587_v55, %v590_v59 }
 0x4b9   :  { %v2212_v62 = vpop.f32.mrf.mxu1  ;;  %2272 = vmatpush3.bf16.msra.mxu0 %v2398_v57 }
 0x4ba   :  { %2285 = vmatprep.subr.bf16.mxu0 %v2554_v1 }
 0x4bb   :  { %v707_v0 = vpop.f32.mrf.mxu1 }
 0x4bc   :  { %v708_v2 = vadd.f32 %v707_v0, %v660_v63 }
 0x4bd   :  { %v2227_v3 = vpop.f32.mrf.mxu1 }
 0x4be   :  { %v788_v4 = vpack.c.bf16 %v708_v2, %v708_v2  ;;  %v1182_v2 = vld [vmem:[#allocation6 + $0x68] sm:$0xff] }
 0x4bf   :  { %v710_v5 = vpop.f32.mrf.mxu1  ;;  %v2430_v7 = vpop.eup %2429 }
 0x4c0   :  { %v793_v6 = vsel %vm549_vm2, %v788_v4, 0  ;;  %v785_v10 = vmul.f32 %v2430_v7, %v2426_v35  ;;  %v1239_v4 = vstv %s2044_s9  ;;  %v1242_v5 = vstv %s1241_s10 }
 0x4c1   :  { %v2228_v8 = vpop.f32.mrf.mxu1  ;;  %2236 = vmatpush3.bf16.msra.mxu1 %v793_v6 }
 0x4c2   :  { %2249 = vmatprep.subr.bf16.mxu1 %v2554_v1 }
 0x4c3   :  { %v2432_v9 = vpop.eup %2431 }
 0x4c4   :  { %v786_v11 = vmul.f32 %v2432_v9, %v2428_v37  ;;  %v1243_v9 = vmul.f32 %v1242_v5, %v2634_v42  ;;  %v2402_v42 = vld [vmem:[#allocation2 + $0xc0] sm:$0xff]  }
 0x4c6   :  { %v787_v13 = vpack.c.bf16 %v786_v11, %v785_v10 }
 0x4c8   :  { %2238 = vmatmul.mubr.msk.bf16.vlgmr.msra.gmra.mxu1 %vm517_vm4, %v787_v13 }
 0x4c9   :  { %2250 = vmatpush3.bf16.msra.mxu1 %v2393_v12  ;;  %2253 = vmatprep.mubr.msk.bf16.mxu1 %vm2555_vm0, %v2554_v1 }
 0x4ca   :  { %2251 = vmatprep.subr.bf16.mxu1 %v2554_v1 }
 0x4cd   :  { %2252 = vmatpush3.bf16.msra.mxu1 %v2394_v14 }
 0x4ce   :  { %2263 = vmatprep.subr.bf16.mxu1 %v2554_v1 }
 0x4d0   :  { %2254 = vmatmul.mubr.msk.bf16.vlgmr.msra.gmra.mxu1 %vm91_vm1, %v2642_v46 }
 0x4d1   :  { %2265 = vmatprep.mubr.msk.bf16.mxu1 %vm2555_vm0, %v2554_v1 }
 0x4e5   :  { %v1009_v15 = vpop.xlane.xlu0 %1008 }
 0x4e6   :  { %v1013_v16 = vmax.f32 %v1009_v15, -1e+30 }
 0x4e8   :  { %v1015_v49 = vsub.f32 %v1001_v40, %v1013_v16 }
 0x4e9   :  { %v1012_v17 = vpop.xlane.xlu1 %1011 }
 0x4ea   :  { %v1017_v18 = vmul.f32 1.442695, %v1015_v49  ;;  %v1014_v19 = vmax.f32 %v1012_v17, -1e+30 }
 0x4ec   :  { %2433 = vpow2.f32 %v1017_v18  ;;  %v1016_v20 = vsub.f32 %v1004_v50, %v1014_v19  ;;  %v2395_v50 = vld [vmem:[#allocation2 + $0xb8] sm:$0xff]   ;;  %v2399_v18 = vld [vmem:[#allocation2 + $0x148] sm:$0xff]  }
 0x4ed   :  { %v2400_v19 = vld [vmem:[#allocation2 + $0xc8] sm:$0xff]  }
 0x4ee   :  { %v1019_v21 = vmul.f32 1.442695, %v1016_v20  ;;  %v2401_v20 = vld [vmem:[#allocation2 + $0x140] sm:$0xff]  }
 0x4f0   :  { %2435 = vpow2.f32 %v1019_v21  ;;  %v1090_v21 = vld [vmem:[#allocation6 + $0x48] sm:$0xff] }
 0x4f9   :  { %v2434_v22 = vpop.eup %2433 }
 0x4fa   :  { %v1021_v23 = vsel %vm517_vm4, %v2434_v22, 0.0 }
 0x4fb   :  { %1022 = vadd.xlane.f32.xlu0 %v1021_v23  ;;  %v1147_v23 = vstv %s1146_s11 }
 0x4fd   :  { %v2436_v24 = vpop.eup %2435 }
 0x4fe   :  { %v1024_v46 = vsel %vm517_vm4, %v2436_v24, 0.0 }
 0x4ff   :  { %1025 = vadd.xlane.f32.xlu1 %v1024_v46 }
 0x584   :  { %v1023_v25 = vpop.xlane.xlu0 %1022 }
 0x585   :  { %v1027_v26 = vmax.f32 %v1023_v25, 1e-30 }
 0x587   :  { %2437 = vrcp.f32 %v1027_v26 }
 0x588   :  { %v829_v27 = vpop.f32.mrf.mxu1  ;;  %v1026_v28 = vpop.xlane.xlu1 %1025 }
 0x589   :  { %v1028_v29 = vmax.f32 %v1026_v28, 1e-30 }
 0x58a   :  { %v2239_v30 = vpop.f32.mrf.mxu1 }
 0x58b   :  { %2439 = vrcp.f32 %v1028_v29 }
 0x58c   :  { %v832_v31 = vpop.f32.mrf.mxu1 }
 0x58d   :  { %v836_v45 = vsel %vm71_vm3, %v829_v27, %v832_v31 }
 0x58e   :  { %v2240_v32 = vpop.f32.mrf.mxu1  ;;  %v1173_v51 = vadd.f32 %v836_v45, %v2746_v60 }
 0x590   :  { %v949_v34 = vpop.f32.mrf.mxu1  ;;  %v1174_v54 = vmul.f32 0.5, %v1173_v51 }
 0x591   :  { %v950_v35 = vadd.f32 %v949_v34, %v902_v33 }
 0x592   :  { %v2255_v36 = vpop.f32.mrf.mxu1  ;;  %v1175_v55 = vpack.c.bf16 %v1174_v54, %v1174_v54 }
 0x593   :  { %v1034_v37 = vpack.c.bf16 %v950_v35, %v950_v35  ;;  %v1259_v36 = vld [vmem:[#allocation6 + $0x70] sm:$0xff] }
 0x594   :  { %v952_v44 = vpop.f32.mrf.mxu1  ;;  %v2438_v39 = vpop.eup %2437 }
 0x595   :  { %v1039_v38 = vsel %vm549_vm2, %v1034_v37, 0  ;;  %v1031_v47 = vmul.f32 %v2438_v39, %v2434_v22  ;;  %v1262_v44 = vld [vmem:[#allocation6 + $0x78] sm:$0xff] }
 0x596   :  { %v2256_v40 = vpop.f32.mrf.mxu1  ;;  %2264 = vmatpush3.bf16.msra.mxu1 %v1039_v38 }
 0x597   :  { %2277 = vmatprep.subr.bf16.mxu1 %v2554_v1  ;;  %v2403_v40 = vld [vmem:[#allocation2 + $0xd8] sm:$0xff]  }
 0x598   :  { %v2440_v43 = vpop.eup %2439 }
 0x599   :  { %v1032_v48 = vmul.f32 %v2440_v43, %v2436_v24  ;;  %v1150_v24 = vstv %s1149_s12  ;;  %v2404_v43 = vld [vmem:[#allocation2 + $0xd0] sm:$0xff]  }
 0x59a   :  { %v1151_v27 = vmul.f32 %v1150_v24, %v2632_v41 }
 0x59b   :  { %v1033_v52 = vpack.c.bf16 %v1032_v48, %v1031_v47 }
 0x59d   :  { %2266 = vmatmul.mubr.msk.bf16.vlgmr.msra.gmra.mxu1 %vm517_vm4, %v1033_v52 }
 0x59e   :  { %2278 = vmatpush3.bf16.msra.mxu1 %v2395_v50  ;;  %2281 = vmatprep.mubr.msk.bf16.mxu1 %vm2555_vm0, %v2554_v1 }
 0x59f   :  { %2279 = vmatprep.subr.bf16.mxu1 %v2554_v1 }
 0x5a2   :  { %2280 = vmatpush3.bf16.msra.mxu1 %v2396_v53 }
 0x5a3   :  { %2293 = vmatprep.subr.bf16.mxu1 %v2554_v1 }
 0x5a5   :  { %2282 = vmatmul.mubr.msk.bf16.vlgmr.msra.gmra.mxu1 %vm91_vm1, %v1175_v55  ;;  %v1335_v55 = vld [vmem:[#allocation6 + $0x80] sm:$0xff] }
 0x5a6   :  { %2297 = vmatprep.mubr.msk.bf16.mxu1 %vm2555_vm0, %v2554_v1  ;;  %2294 = vmatpush3.bf16.msra.mxu1 %v2400_v19 }
 0x5a7   :  { %2295 = vmatprep.subr.bf16.mxu1 %v2554_v1 }
 0x5aa   :  { %2296 = vmatpush3.bf16.msra.mxu1 %v2402_v42 }
 0x5ab   :  { %2309 = vmatprep.subr.bf16.mxu1 %v2554_v1 }
 0x65d   :  { %v1075_v58 = vpop.f32.mrf.mxu1 }
 0x65f   :  { %v2267_v59 = vpop.f32.mrf.mxu1 }
 0x661   :  { %v1078_v60 = vpop.f32.mrf.mxu1 }
 0x662   :  { %v1082_v62 = vsel %vm71_vm3, %v1075_v58, %v1078_v60  ;;  %v1271_v58 = vld [vmem:[#allocation6 + $0xd0] sm:$0xff] }
 0x663   :  { %v1083_v63 = vpack.c.bf16 %v1082_v62, %v1082_v62  ;;  %v2268_v0 = vpop.f32.mrf.mxu1 }
 0x665   :  { %2274 = vmatmul.mubr.msk.bf16.vlgmr.msra.gmra.mxu0 %vm91_vm1, %v1083_v63  ;;  %v1232_v3 = vpop.f32.mrf.mxu1 }
 0x666   :  { %v1233_v6 = vadd.f32 %v1232_v3, %v1182_v2  ;;  %2289 = vmatprep.mubr.msk.bf16.mxu0 %vm2555_vm0, %v2554_v1  ;;  %2286 = vmatpush3.bf16.msra.mxu0 %v2399_v18 }
 0x667   :  { %v2283_v7 = vpop.f32.mrf.mxu1  ;;  %2287 = vmatprep.subr.bf16.mxu0 %v2554_v1 }
 0x668   :  { %v1240_v8 = vmul.f32 %v1239_v4, %v1233_v6 }
 0x669   :  { %v1235_v10 = vpop.f32.mrf.mxu1 }
 0x66a   :  { %v1244_v11 = vadd.f32 %v1243_v9, %v1240_v8  ;;  %2288 = vmatpush3.bf16.msra.mxu0 %v2401_v20  ;;  %v1394_v8 = vld [vmem:[#allocation6 + $0x88] sm:$0xff]  ;;  %v1171_v20 = vld [vmem:[#allocation6 + $0x58] sm:$0xff] }
 0x66b   :  { %v2284_v12 = vpop.f32.mrf.mxu1  ;;  %2301 = vmatprep.subr.bf16.mxu0 %v2554_v1 }
 0x66c   :  { %v1245_v13 = vsel %vm91_vm1, %v1244_v11, 0.0 }
 0x66d   :  { %1246 = vadd.xlane.f32.xlu0 %v1245_v13  ;;  %v1168_v13 = vld [vmem:[#allocation6 + $0x50] sm:$0xff] }
 0x6f6   :  { %v1247_v14 = vpop.xlane.xlu0 %1246 }
 0x6f7   :  { %v1248_v15 = vmul.f32 0.03125, %v1247_v14 }
 0x6f9   :  { %v1249_v16 = vsub.f32 %v1244_v11, %v1248_v15 }
 0x6fb   :  { %v1250_v49 = vmul.f32 %v1249_v16, %v1249_v16 }
 0x6fd   :  { %v1251_v17 = vsel %vm91_vm1, %v1250_v49, 0.0 }
 0x6fe   :  { %1252 = vadd.xlane.f32.xlu1 %v1251_v17 }
 0x725   :  { %v1140_v22 = vpop.f32.mrf.mxu0 }
 0x726   :  { %v1141_v46 = vadd.f32 %v1140_v22, %v1090_v21  ;;  %v2406_v22 = vld [vmem:[#allocation2 + $0xe0] sm:$0xff]  }
 0x727   :  { %v2275_v25 = vpop.f32.mrf.mxu0 }
 0x728   :  { %v1148_v26 = vmul.f32 %v1147_v23, %v1141_v46  ;;  %v2054_v46 = vld [vmem:[%s2890_s3 + $0x30] sm:$0xff] }
 0x729   :  { %v1143_v28 = vpop.f32.mrf.mxu0 }
 0x72a   :  { %v1152_v29 = vadd.f32 %v1151_v27, %v1148_v26  ;;  %v2055_v28 = vld [vmem:[%s2890_s3 + $0x38] sm:$0xff] }
 0x72b   :  { %v2276_v30 = vpop.f32.mrf.mxu0 }
 0x72c   :  { %v1153_v31 = vsel %vm91_vm1, %v1152_v29, 0.0 }
 0x72d   :  { %1154 = vadd.xlane.f32.xlu0 %v1153_v31 }
 0x787   :  { %v1253_v32 = vpop.xlane.xlu1 %1252 }
 0x788   :  { %v1254_v33 = vmul.f32 0.03125, %v1253_v32 }
 0x78a   :  { %v1255_v34 = vadd.f32 1e-05, %v1254_v33  ;;  %v1582_v33 = vld [vmem:[#allocation6 + $0x90] sm:$0xff] }
 0x78c   :  { %2441 = vrsqrt.f32 %v1255_v34 }
 0x799   :  { %v2442_v35 = vpop.eup %2441 }
 0x79a   :  { %v1257_v37 = vmul.f32 %v2442_v35, %v1249_v16  ;;  %v2405_v16 = vld [vmem:[#allocation2 + $0xe8] sm:$0xff]  }
 0x79c   :  { %v1260_v38 = vmul.f32 %v1259_v36, %v1257_v37 }
 0x79e   :  { %v2790_v39 = vadd.f32 %v1262_v44, %v1260_v38 }
 0x7a0   :  { %v1264_v41 = vpack.c.bf16 %v2790_v39, %v2790_v39 }
 0x7a2   :  { %2290 = vmatmul.mubr.msk.bf16.vlgmr.msra.gmra.mxu0 %vm91_vm1, %v1264_v41  ;;  %2298 = vmatmul.mubr.msk.bf16.vlgmr.msra.gmra.mxu1 %vm91_vm1, %v1264_v41 }
 0x7a3   :  { %2302 = vmatpush3.bf16.msra.mxu0 %v2403_v40  ;;  %2305 = vmatprep.mubr.msk.bf16.mxu0 %vm2555_vm0, %v2554_v1 }
 0x7a4   :  { %2303 = vmatprep.subr.bf16.mxu0 %v2554_v1  ;;  %2311 = vmatprep.mubr.msk.bf16.mxu1 %vm2555_vm0, %v2554_v1 }
 0x7a7   :  { %2304 = vmatpush3.bf16.msra.mxu0 %v2404_v43 }
 0x7a8   :  { %2315 = vmatprep.subr.bf16.mxu0 %v2554_v1 }
 0x7aa   :  { %2306 = vmatmul.mubr.msk.bf16.vlgmr.msra.gmra.mxu0 %vm91_vm1, %v1264_v41 }
 0x7ab   :  { %2317 = vmatprep.mubr.msk.bf16.mxu0 %vm2555_vm0, %v2554_v1 }
 0x7b6   :  { %v1155_v45 = vpop.xlane.xlu0 %1154 }
 0x7b7   :  { %v1157_v47 = vmul.f32 0.03125, %v1155_v45 }
 0x7b9   :  { %v1158_v48 = vsub.f32 %v1152_v29, %v1157_v47 }
 0x7bb   :  { %v1159_v50 = vmul.f32 %v1158_v48, %v1158_v48 }
 0x7bd   :  { %v1160_v51 = vsel %vm91_vm1, %v1159_v50, 0.0 }
 0x7be   :  { %1161 = vadd.xlane.f32.xlu1 %v1160_v51 }
 0x847   :  { %v1162_v52 = vpop.xlane.xlu1 %1161 }
 0x848   :  { %v1163_v53 = vmul.f32 0.03125, %v1162_v52 }
 0x84a   :  { %v1164_v54 = vadd.f32 1e-05, %v1163_v53 }
 0x84c   :  { %2443 = vrsqrt.f32 %v1164_v54 }
 0x859   :  { %v2444_v0 = vpop.eup %2443 }
 0x85a   :  { %v1166_v9 = vmul.f32 %v2444_v0, %v1158_v48 }
 0x85c   :  { %v1169_v18 = vmul.f32 %v1168_v13, %v1166_v9 }
 0x85e   :  { %v1172_v23 = vadd.f32 %v1171_v20, %v1169_v18 }
 0x860   :  { %v2818_v24 = vpack.c.bf16 %v1172_v23, %v1172_v23 }
 0x862   :  { %v1321_v56 = vpop.f32.mrf.mxu0  ;;  %v1382_v57 = vpop.f32.mrf.mxu1 }
 0x863   :  { %v1383_v59 = vadd.f32 %v1382_v57, %v1335_v55  ;;  %v1322_v2 = vadd.f32 %v1321_v56, %v1271_v58  ;;  %v2064_v58 = vld [vmem:[%s2890_s3 + $0x40] sm:$0xff] }
 0x864   :  { %v2291_v60 = vpop.f32.mrf.mxu0  ;;  %v2299_v62 = vpop.f32.mrf.mxu1 }
 0x865   :  { %v1448_v63 = vpack.c.bf16 %v1383_v59, %v1383_v59  ;;  %v1327_v10 = vsel %vm71_vm3, %v1322_v2, 0.0  ;;  %v1328_v11 = vsel %vm71_vm3, 0.0, %v1322_v2 }
 0x866   :  { %v1324_v3 = vpop.f32.mrf.mxu0  ;;  %v1385_v4 = vpop.f32.mrf.mxu1  ;;  %v1447_v49 = vpack.c.bf16 %v1328_v11, %v1327_v10 }
 0x867   :  { %v1456_v5 = vsel %vm91_vm1, %v1448_v63, 0  ;;  %v2065_v63 = vld [vmem:[%s2890_s3 + $0x48] sm:$0xff]  ;;  %s2071_s3 = sld [smem:[#allocation8 + $0x3]] }
 0x868   :  { %v2292_v6 = vpop.f32.mrf.mxu0  ;;  %v2300_v7 = vpop.f32.mrf.mxu1  ;;  %2310 = vmatpush3.bf16.xpose.msra.mxu1 %v1456_v5 }
 0x869   :  { %2321 = vmatprep.subr.bf16.mxu1 %v2554_v1 }
 0x86a   :  { %v1441_v12 = vpop.f32.mrf.mxu0 }
 0x86b   :  { %v1442_v14 = vadd.f32 %v1441_v12, %v1394_v8 }
 0x86c   :  { %v2307_v15 = vpop.f32.mrf.mxu0 }
 0x86d   :  { %v1526_v17 = vpack.c.bf16 %v1442_v14, %v1442_v14  ;;  %v2407_v14 = vld [vmem:[#allocation2 + $0xf8] sm:$0xff]   ;;  %s1889_s6 = ssub.f32 1.0, %s2071_s3 }
 0x86e   :  { %v1444_v19 = vpop.f32.mrf.mxu0 }
 0x86f   :  { %v1531_v42 = vsel %vm549_vm2, %v1526_v17, 0  ;;  %2312 = vmatmul.mubr.msk.bf16.vlgmr.msra.gmra.mxu1 %vm91_vm1, %v1447_v49 }
 0x870   :  { %v2308_v21 = vpop.f32.mrf.mxu0  ;;  %2316 = vmatpush3.bf16.msra.mxu0 %v1531_v42  ;;  %2322 = vmatpush3.bf16.msra.mxu1 %v2405_v16  ;;  %v2408_v16 = vld [vmem:[#allocation2 + $0xf0] sm:$0xff]  }
 0x871   :  { %2323 = vmatprep.subr.bf16.mxu1 %v2554_v1  ;;  %2325 = vmatprep.mubr.msk.bf16.mxu1 %vm2555_vm0, %v2554_v1 }
 0x872   :  { %2329 = vmatprep.subr.bf16.mxu0 %v2554_v1 }
 0x874   :  { %2324 = vmatpush3.bf16.msra.mxu1 %v2406_v22 }
 0x875   :  { %2337 = vmatprep.subr.bf16.mxu1 %v2554_v1 }
 0x877   :  { %2326 = vmatmul.mubr.msk.bf16.vlgmr.msra.gmra.mxu1 %vm91_vm1, %v2818_v24 }
 0x878   :  { %2339 = vmatprep.mubr.msk.bf16.mxu1 %vm2555_vm0, %v2554_v1 }
 0x92f   :  { %v1492_v25 = vpop.f32.mrf.mxu1 }
 0x930   :  { %v1493_v26 = vadd.f32 %v2054_v46, %v1492_v25 }
 0x931   :  { %v2313_v27 = vpop.f32.mrf.mxu1 }
 0x932   :  { %v1499_v29 = vsel %vm517_vm4, %v1493_v26, -inf }
 0x933   :  { %1500 = vmax.xlane.f32.xlu0 %v1499_v29  ;;  %v1495_v30 = vpop.f32.mrf.mxu1 }
 0x934   :  { %v1496_v31 = vadd.f32 %v2055_v28, %v1495_v30 }
 0x935   :  { %v2314_v32 = vpop.f32.mrf.mxu1 }
 0x936   :  { %v1502_v34 = vsel %vm517_vm4, %v1496_v31, -inf }
 0x937   :  { %1503 = vmax.xlane.f32.xlu1 %v1502_v34  ;;  %v1632_v35 = vpop.f32.mrf.mxu1 }
 0x938   :  { %v1633_v36 = vadd.f32 %v1632_v35, %v1582_v33  ;;  %v1644_v35 = vld [vmem:[#allocation6 + $0x98] sm:$0xff] }
 0x939   :  { %v2327_v37 = vpop.f32.mrf.mxu1 }
 0x93a   :  { %v1697_v44 = vpack.c.bf16 %v1633_v36, %v1633_v36 }
 0x93b   :  { %v1635_v38 = vpop.f32.mrf.mxu1 }
 0x93c   :  { %v1702_v40 = vsel %vm91_vm1, %v1697_v44, 0 }
 0x93d   :  { %v2328_v41 = vpop.f32.mrf.mxu1  ;;  %2338 = vmatpush3.bf16.xpose.msra.mxu1 %v1702_v40 }
 0x93e   :  { %2349 = vmatprep.subr.bf16.mxu1 %v2554_v1 }
 0x944   :  { %2340 = vmatmul.mubr.msk.bf16.vlgmr.msra.gmra.mxu1 %vm91_vm1, %v1447_v49 }
 0x945   :  { %2353 = vmatprep.mubr.msk.bf16.mxu1 %vm2555_vm0, %v2554_v1 }
 0x9bc   :  { %v1501_v43 = vpop.xlane.xlu0 %1500 }
 0x9bd   :  { %v1505_v45 = vmax.f32 %v1501_v43, -1e+30 }
 0x9bf   :  { %v1507_v47 = vsub.f32 %v1493_v26, %v1505_v45 }
 0x9c0   :  { %v1504_v48 = vpop.xlane.xlu1 %1503 }
 0x9c1   :  { %v1509_v50 = vmul.f32 1.442695, %v1507_v47  ;;  %v1506_v51 = vmax.f32 %v1504_v48, -1e+30 }
 0x9c3   :  { %2445 = vpow2.f32 %v1509_v50  ;;  %v1508_v52 = vsub.f32 %v1496_v31, %v1506_v51 }
 0x9c5   :  { %v1511_v53 = vmul.f32 1.442695, %v1508_v52  ;;  %v2409_v52 = vld [vmem:[#allocation2 + $0x158] sm:$0xff]  }
 0x9c6   :  { %2350 = vmatpush3.bf16.msra.mxu1 %v2409_v52 }
 0x9c7   :  { %2447 = vpow2.f32 %v1511_v53  ;;  %2351 = vmatprep.subr.bf16.mxu1 %v2554_v1  ;;  %v2410_v53 = vld [vmem:[#allocation2 + $0x150] sm:$0xff]  }
 0x9ca   :  { %2352 = vmatpush3.bf16.msra.mxu1 %v2410_v53 }
 0x9d0   :  { %v2446_v54 = vpop.eup %2445 }
 0x9d1   :  { %v1513_v55 = vsel %vm517_vm4, %v2446_v54, 0.0 }
 0x9d2   :  { %1514 = vadd.xlane.f32.xlu0 %v1513_v55 }
 0x9d4   :  { %v2448_v56 = vpop.eup %2447 }
 0x9d5   :  { %v1516_v57 = vsel %vm517_vm4, %v2448_v56, 0.0 }
 0x9d6   :  { %1517 = vadd.xlane.f32.xlu1 %v1516_v57 }
 0xa04   :  { %v1738_v59 = vpop.f32.mrf.mxu1 }
 0xa05   :  { %v1739_v60 = vadd.f32 %v2064_v58, %v1738_v59 }
 0xa06   :  { %v2341_v62 = vpop.f32.mrf.mxu1 }
 0xa07   :  { %v1745_v0 = vsel %vm517_vm4, %v1739_v60, -inf }
 0xa08   :  { %1746 = vmax.xlane.f32.xlu0 %v1745_v0  ;;  %v1741_v2 = vpop.f32.mrf.mxu1 }
 0xa09   :  { %v1742_v3 = vadd.f32 %v2065_v63, %v1741_v2  ;;  %v1830_v63 = vld [vmem:[#allocation6 + $0xd8] sm:$0xff]  ;;  %v1887_v2 = vstv %s2071_s3 }
 0xa0a   :  { %v2342_v4 = vpop.f32.mrf.mxu1 }
 0xa0b   :  { %v1748_v5 = vsel %vm517_vm4, %v1742_v3, -inf }
 0xa0c   :  { %1749 = vmax.xlane.f32.xlu1 %v1748_v5 }
 0xa5b   :  { %v1515_v6 = vpop.xlane.xlu0 %1514 }
 0xa5c   :  { %v1519_v7 = vmax.f32 %v1515_v6, 1e-30 }
 0xa5e   :  { %2449 = vrcp.f32 %v1519_v7 }
 0xa5f   :  { %v1518_v8 = vpop.xlane.xlu1 %1517 }
 0xa60   :  { %v1520_v9 = vmax.f32 %v1518_v8, 1e-30 }
 0xa62   :  { %2451 = vrcp.f32 %v1520_v9 }
 0xa6b   :  { %v2450_v10 = vpop.eup %2449 }
 0xa6c   :  { %v1523_v12 = vmul.f32 %v2450_v10, %v2446_v54 }
 0xa6f   :  { %v2452_v11 = vpop.eup %2451 }
 0xa70   :  { %v1524_v13 = vmul.f32 %v2452_v11, %v2448_v56 }
 0xa72   :  { %v1525_v15 = vpack.c.bf16 %v1524_v13, %v1523_v12 }
 0xa74   :  { %2318 = vmatmul.mubr.msk.bf16.vlgmr.msra.gmra.mxu0 %vm517_vm4, %v1525_v15 }
 0xa75   :  { %2330 = vmatpush3.bf16.msra.mxu0 %v2407_v14  ;;  %2333 = vmatprep.mubr.msk.bf16.mxu0 %vm2555_vm0, %v2554_v1 }
 0xa76   :  { %2331 = vmatprep.subr.bf16.mxu0 %v2554_v1 }
 0xa79   :  { %2332 = vmatpush3.bf16.msra.mxu0 %v2408_v16  ;;  %v2411_v16 = vld [vmem:[%s2891_s4 + $0x8] sm:$0xff]  }
 0xa7a   :  { %2343 = vmatprep.subr.bf16.mxu0 %v2554_v1 }
 0xa7c   :  { %2334 = vmatmul.mubr.msk.bf16.vlgmr.msra.gmra.mxu0 %vm91_vm1, %v2818_v24 }
 0xa7d   :  { %2345 = vmatprep.mubr.msk.bf16.mxu0 %vm2555_vm0, %v2554_v1 }
 0xa91   :  { %v1747_v49 = vpop.xlane.xlu0 %1746 }
 0xa92   :  { %v1751_v17 = vmax.f32 %v1747_v49, -1e+30 }
 0xa94   :  { %v1753_v18 = vsub.f32 %v1739_v60, %v1751_v17 }
 0xa95   :  { %v1750_v19 = vpop.xlane.xlu1 %1749 }
 0xa96   :  { %v1755_v20 = vmul.f32 1.442695, %v1753_v18  ;;  %v1752_v42 = vmax.f32 %v1750_v19, -1e+30 }
 0xa98   :  { %2453 = vpow2.f32 %v1755_v20  ;;  %v1754_v21 = vsub.f32 %v1742_v3, %v1752_v42  ;;  %v1890_v3 = vstv %s1889_s6  ;;  %v1907_v20 = vld [vmem:[#allocation6 + $0xe0] sm:$0xff] }
 0xa99   :  { %v1891_v7 = vmul.f32 %v1890_v3, %v2790_v39  ;;  %v2412_v39 = vld [vmem:[%s2891_s4] sm:$0xff]   ;;  %s2556_s4 = smov [#allocation9]  }
 0xa9a   :  { %v1757_v22 = vmul.f32 1.442695, %v1754_v21  ;;  %v1910_v21 = vld [vmem:[#allocation6 + $0xe8] sm:$0xff]  ;;  %s1986_s24 = sshll.u32 %s2556_s4, 4  ;;  %s1987_s24 = int_to_ptr.vmem [resolvable:$true] %s1986_s24 }
 0xa9b   :  { %s2519_s25 = scalar_lea.vmem %s1987_s24, 128  ;;  %p2524_p2 = scmp.lt.s32.totalorder %s1987_s24, %s1987_s24 }
 0xa9c   :  { %2455 = vpow2.f32 %v1757_v22  ;;  %p2520_p1 = scmp.ne.s32.totalorder %s1987_s24, %s2519_s25  ;;  %p2525_p3 = scmp.lt.s32.totalorder %s2519_s25, %s2519_s25 }
 0xa9e   :  { %p2526_p4 = por %p2525_p3, %p2524_p2 }
 0xaa0   :  { %p2527_p5 = pnand %p2526_p4, %p2520_p1 }
 0xaa5   :  { %v2454_v23 = vpop.eup %2453 }
 0xaa6   :  { %v1759_v46 = vsel %vm517_vm4, %v2454_v23, 0.0 }
 0xaa7   :  { %1760 = vadd.xlane.f32.xlu0 %v1759_v46 }
 0xaa9   :  { %v2456_v25 = vpop.eup %2455 }
 0xaaa   :  { %v1762_v24 = vsel %vm517_vm4, %v2456_v25, 0.0 }
 0xaab   :  { %1763 = vadd.xlane.f32.xlu1 %v1762_v24 }
 0xb30   :  { %v1761_v26 = vpop.xlane.xlu0 %1760 }
 0xb31   :  { %v1765_v27 = vmax.f32 %v1761_v26, 1e-30 }
 0xb33   :  { %2457 = vrcp.f32 %v1765_v27 }
 0xb34   :  { %v1764_v28 = vpop.xlane.xlu1 %1763  ;;  %v1567_v29 = vpop.f32.mrf.mxu0 }
 0xb35   :  { %v1766_v30 = vmax.f32 %v1764_v28, 1e-30 }
 0xb36   :  { %v2319_v31 = vpop.f32.mrf.mxu0 }
 0xb37   :  { %2459 = vrcp.f32 %v1766_v30 }
 0xb38   :  { %v1570_v32 = vpop.f32.mrf.mxu0 }
 0xb39   :  { %v1574_v33 = vsel %vm71_vm3, %v1567_v29, %v1570_v32 }
 0xb3a   :  { %v2320_v34 = vpop.f32.mrf.mxu0 }
 0xb3c   :  { %v1691_v36 = vpop.f32.mrf.mxu0 }
 0xb3d   :  { %v1692_v37 = vadd.f32 %v1691_v36, %v1644_v35 }
 0xb3e   :  { %v2335_v44 = vpop.f32.mrf.mxu0 }
 0xb3f   :  { %v1772_v38 = vpack.c.bf16 %v1692_v37, %v1692_v37 }
 0xb40   :  { %v1694_v40 = vpop.f32.mrf.mxu0  ;;  %v2458_v43 = vpop.eup %2457 }
 0xb41   :  { %v1777_v41 = vsel %vm549_vm2, %v1772_v38, 0  ;;  %v1769_v48 = vmul.f32 %v2458_v43, %v2454_v23 }
 0xb42   :  { %v2336_v45 = vpop.f32.mrf.mxu0  ;;  %2344 = vmatpush3.bf16.msra.mxu0 %v1777_v41 }
 0xb43   :  { %2357 = vmatprep.subr.bf16.mxu0 %v2554_v1 }
 0xb44   :  { %v2460_v47 = vpop.eup %2459 }
 0xb45   :  { %v1770_v50 = vmul.f32 %v2460_v47, %v2456_v25  ;;  %v1917_v25 = vld [vmem:[%s2892_s5] sm:$0xff] }
 0xb47   :  { %v1771_v51 = vpack.c.bf16 %v1770_v50, %v1769_v48 }
 0xb49   :  { %2346 = vmatmul.mubr.msk.bf16.vlgmr.msra.gmra.mxu0 %vm517_vm4, %v1771_v51 }
 0xb4a   :  { %2361 = vmatprep.mubr.msk.bf16.mxu0 %vm2555_vm0, %v2554_v1  ;;  %2358 = vmatpush3.bf16.msra.mxu0 %v2411_v16 }
 0xb4b   :  { %2359 = vmatprep.subr.bf16.mxu0 %v2554_v1 }
 0xb4e   :  { %2360 = vmatpush3.bf16.msra.mxu0 %v2412_v39 }
 0xc09   :  { %v1813_v54 = vpop.f32.mrf.mxu0 }
 0xc0b   :  { %v2347_v55 = vpop.f32.mrf.mxu0 }
 0xc0d   :  { %v1816_v56 = vpop.f32.mrf.mxu0 }
 0xc0e   :  { %v1820_v57 = vsel %vm71_vm3, %v1813_v54, %v1816_v56 }
 0xc0f   :  { %v1821_v58 = vadd.f32 %v1820_v57, %v1574_v33  ;;  %v2348_v59 = vpop.f32.mrf.mxu0 }
 0xc11   :  { %v1822_v60 = vmul.f32 0.5, %v1821_v58 }
 0xc13   :  { %v1823_v62 = vpack.c.bf16 %v1822_v60, %v1822_v60 }
 0xc15   :  { %2354 = vmatmul.mubr.msk.bf16.vlgmr.msra.gmra.mxu1 %vm91_vm1, %v1823_v62 }
 0xcd5   :  { %v1880_v0 = vpop.f32.mrf.mxu1 }
 0xcd6   :  { %v1881_v4 = vadd.f32 %v1880_v0, %v1830_v63 }
 0xcd7   :  { %v2355_v5 = vpop.f32.mrf.mxu1 }
 0xcd8   :  { %v1888_v6 = vmul.f32 %v1887_v2, %v1881_v4 }
 0xcd9   :  { %v1883_v8 = vpop.f32.mrf.mxu1 }
 0xcda   :  { %v1892_v61 = vadd.f32 %v1891_v7, %v1888_v6 }
 0xcdb   :  { %v2356_v9 = vpop.f32.mrf.mxu1 }
 0xcdc   :  { %v1893_v10 = vsel %vm91_vm1, %v1892_v61, 0.0 }
 0xcdd   :  { %1894 = vadd.xlane.f32.xlu0 %v1893_v10 }
 0xd66   :  { %v1895_v11 = vpop.xlane.xlu0 %1894 }
 0xd67   :  { %v1896_v12 = vmul.f32 0.03125, %v1895_v11 }
 0xd69   :  { %v1897_v13 = vsub.f32 %v1892_v61, %v1896_v12 }
 0xd6b   :  { %v1898_v14 = vmul.f32 %v1897_v13, %v1897_v13 }
 0xd6d   :  { %v1899_v15 = vsel %vm91_vm1, %v1898_v14, 0.0 }
 0xd6e   :  { %1900 = vadd.xlane.f32.xlu1 %v1899_v15 }
 0xdf7   :  { %v1901_v49 = vpop.xlane.xlu1 %1900 }
 0xdf8   :  { %v1902_v17 = vmul.f32 0.03125, %v1901_v49 }
 0xdfa   :  { %v1903_v18 = vadd.f32 1e-05, %v1902_v17 }
 0xdfc   :  { %2461 = vrsqrt.f32 %v1903_v18 }
 0xe09   :  { %v2462_v19 = vpop.eup %2461 }
 0xe0a   :  { %v1905_v42 = vmul.f32 %v2462_v19, %v1897_v13 }
 0xe0c   :  { %v1908_v22 = vmul.f32 %v1907_v20, %v1905_v42 }
 0xe0e   :  { %v1911_v23 = vadd.f32 %v1910_v21, %v1908_v22 }
 0xe10   :  { %v1912_v46 = vpack.c.bf16 %v1911_v23, %v1911_v23 }
 0xe12   :  { %2362 = vmatmul.mubr.msk.bf16.vlgmr.msra.gmra.mxu0 %vm91_vm1, %v1912_v46 }
 0xed2   :  { %v1967_v24 = vpop.f32.mrf.mxu0 }
 0xed3   :  { %v1968_v1 = vadd.f32 %v1967_v24, %v1917_v25 }
 0xed4   :  { %v2363_v26 = vpop.f32.mrf.mxu0 }
 0xed5   :  { %v2075_v27 = vmul.f32 -1.442695, %v1968_v1 }
 0xed6   :  { %v1970_v28 = vpop.f32.mrf.mxu0 }
 0xed7   :  { %2463 = vpow2.f32 %v2075_v27 }
 0xed8   :  { %v2364_v29 = vpop.f32.mrf.mxu0 }
 0xee4   :  { %v2464_v30 = vpop.eup %2463 }
 0xee5   :  { %v1976_v31 = vadd.f32 1.0, %v2464_v30 }
 0xee7   :  { %2465 = vrcp.f32 %v1976_v31 }
 0xef4   :  { %v2466_v32 = vpop.eup %2465 }
 0xef5   :  { %1979 = vst [vmem:[#allocation9] sm:$0xff] %v2466_v32 }
 0xef6   :  { %2530 = shalt.err (!%p2527_p5)
}
 0xef7   :  { %1989 = dma.vmem_to_hbm [thread:$0]  %s1987_s24, 128, %s2894_s7, [#allocation4]  }
 0xef8   :  { %2545 = dma.done.wait [#allocation4], 128  }
 0xef9   :  { %2546 = vsyncadd [#allocation4], 4294967168 }
 0xefa   :  { %1993 = vsyncpa [#allocation3], 1 }
 0xefb   :  { %1994 = vsyncpa [#allocation7], 1 }
 0xefc   :  { %1995 = vsyncpa [#allocation4], 1 }
 0xefd   :  { %1996 = vsyncpa [#allocation5], 1 }

</bundles_post_ra>
